<compile_context>
chip_gen: v7x
topology: tpu7x:2x2x1
jax: 0.10.0
libtpu: 0.0.40
codegen_flags: <defaults>
</compile_context>

<pallas_src>
import functools

import jax
import jax.numpy as jnp
from jax.experimental import pallas as pl
from jax.experimental.pallas import tpu as pltpu

NEG_SLOPE = 0.01          # nn.LeakyReLU() default
CDT = jnp.bfloat16        # activation / weight storage dtype (f32 accumulate)
RES_SCALE = 0.2


def _vmem_limit_bytes():
    try:
        cap = int(pltpu.get_tpu_info().vmem_capacity_bytes)
        return max(32 * 1024 * 1024, (3 * cap) // 4)
    except Exception:
        return 48 * 1024 * 1024   # safe on v5e / v6e / v7x


_VMEM_LIMIT = _vmem_limit_bytes()


# ----------------------------------------------------------------------------
# Fused conv kernel:
#   concat(inputs) -> zero-pad (in VMEM) -> KxK conv -> +bias -> [LeakyReLU]
#   -> chained residual epilogue (y = y*s + r) -> bf16 store
# ----------------------------------------------------------------------------
def _make_conv_kernel(H, W, K, cins, Cout, lrelu, res_scales, use_scratch):
    pad = (K - 1) // 2
    Ctot = sum(cins)
    n_in = len(cins)
    n_res = len(res_scales)

    def kernel(*refs):
        in_refs = refs[:n_in]
        w_ref = refs[n_in]
        b_ref = refs[n_in + 1]
        res_refs = refs[n_in + 2:n_in + 2 + n_res]
        o_ref = refs[n_in + 2 + n_res]

        if use_scratch:
            pad_ref = refs[n_in + 3 + n_res]
            # Fused zero-padding + channel concat, entirely in VMEM: the
            # unpadded per-source maps are read straight from HBM; no padded
            # or concatenated copies ever round-trip through HBM.
            if pad > 0:
                pad_ref[...] = jnp.zeros_like(pad_ref)
            off = 0
            for r, c in zip(in_refs, cins):
                pad_ref[pad:pad + H, pad:pad + W, off:off + c] = r[0]
                off += c

            def tap(dy, dx):
                return pad_ref[dy:dy + H, dx:dx + W, :].reshape(H * W, Ctot)
        else:  # 1x1 conv, single source: matmul directly on the input block.
            x_flat = in_refs[0][0].reshape(H * W, Ctot)

            def tap(dy, dx):
                return x_flat

        # Direct conv as K*K shifted matmuls; contraction dim is the full
        # concatenated channel count (deeper MXU fill than per-source taps).
        w = w_ref[...]
        acc = jnp.zeros((H * W, Cout), jnp.float32)
        for dy in range(K):
            for dx in range(K):
                acc = acc + jnp.dot(tap(dy, dx), w[dy, dx],
                                    preferred_element_type=jnp.float32)

        # Epilogue on the f32 accumulator.
        acc = acc + b_ref[...]
        if lrelu:
            acc = jnp.where(acc >= 0, acc, acc * NEG_SLOPE)
        for s, r in zip(res_scales, res_refs):
            acc = acc * s + r[0].reshape(H * W, Cout).astype(jnp.float32)
        o_ref[0] = acc.reshape(H, W, Cout).astype(o_ref.dtype)

    return kernel


@functools.lru_cache(maxsize=None)
def _build_conv_call(N, H, W, K, cins, Cout, lrelu, res_scales):
    pad = (K - 1) // 2
    Ctot = sum(cins)
    use_scratch = (pad > 0) or (len(cins) > 1)
    kernel = _make_conv_kernel(H, W, K, cins, Cout, lrelu, res_scales,
                               use_scratch)

    in_specs = [pl.BlockSpec((1, H, W, c), lambda n: (n, 0, 0, 0))
                for c in cins]
    in_specs.append(pl.BlockSpec((K, K, Ctot, Cout), lambda n: (0, 0, 0, 0)))
    in_specs.append(pl.BlockSpec((1, Cout), lambda n: (0, 0)))
    in_specs += [pl.BlockSpec((1, H, W, Cout), lambda n: (n, 0, 0, 0))
                 for _ in res_scales]

    scratch_shapes = []
    if use_scratch:
        scratch_shapes.append(
            pltpu.VMEM((H + 2 * pad, W + 2 * pad, Ctot), CDT))

    return pl.pallas_call(
        kernel,
        out_shape=jax.ShapeDtypeStruct((N, H, W, Cout), CDT),
        grid=(N,),
        in_specs=in_specs,
        out_specs=pl.BlockSpec((1, H, W, Cout), lambda n: (n, 0, 0, 0)),
        scratch_shapes=scratch_shapes,
        compiler_params=pltpu.CompilerParams(
            dimension_semantics=("parallel",),
            vmem_limit_bytes=_VMEM_LIMIT,
        ),
    )


def pallas_conv(inputs, w, b, *, lrelu=False, residuals=()):
    """inputs: list of NHWC arrays (logically channel-concatenated);
    w: (K, K, sum(Cin), Cout); b: (Cout,);
    residuals: tuple of (scale, array) applied as y = y*scale + array."""
    N, H, W, _ = inputs[0].shape
    K, Cout = int(w.shape[0]), int(w.shape[-1])
    cins = tuple(int(a.shape[-1]) for a in inputs)
    scales = tuple(float(s) for s, _ in residuals)
    call = _build_conv_call(int(N), int(H), int(W), K, cins, Cout,
                            bool(lrelu), scales)
    args = [a.astype(CDT) for a in inputs]
    args += [w.astype(CDT), b.astype(jnp.float32).reshape(1, Cout)]
    args += [r.astype(CDT) for _, r in residuals]
    return call(*args)


# ----------------------------------------------------------------------------
# Pure-JAX reference conv with the same dtype recipe (for validation).
# ----------------------------------------------------------------------------
def ref_conv(inputs, w, b, *, lrelu=False, residuals=()):
    x = (inputs[0].astype(CDT) if len(inputs) == 1 else
         jnp.concatenate([a.astype(CDT) for a in inputs], axis=-1))
    pad = (int(w.shape[0]) - 1) // 2
    y = jax.lax.conv_general_dilated(
        x, w.astype(CDT), (1, 1), [(pad, pad), (pad, pad)],
        dimension_numbers=("NHWC", "HWIO", "NHWC"),
        preferred_element_type=jnp.float32)
    y = y + b.astype(jnp.float32).reshape(1, 1, 1, -1)
    if lrelu:
        y = jnp.where(y >= 0, y, y * NEG_SLOPE)
    for s, r in residuals:
        y = y * s + r.astype(CDT).astype(jnp.float32)
    return y.astype(CDT)


# ----------------------------------------------------------------------------
# Glue (plain JAX, inside the single outer jit)
# ----------------------------------------------------------------------------
def pixel_shuffle_nhwc(x, r):
    # out[n, h*r+i, w*r+j, c] = in[n, h, w, c*r*r + i*r + j]  (PyTorch semantics)
    N, H, W, C = x.shape
    Co = C // (r * r)
    x = x.reshape(N, H, W, Co, r, r)
    x = x.transpose(0, 1, 4, 2, 5, 3)
    return x.reshape(N, H * r, W * r, Co)


# ----------------------------------------------------------------------------
# Forward pass, parametric in the conv implementation (pallas or reference)
# ----------------------------------------------------------------------------
def _rdb(conv, x, layers, extra_res=()):
    feats = [x]
    for i in range(4):
        feats.append(conv(feats, layers[i]["w"], layers[i]["b"], lrelu=True))
    # layer5 fuses:  lrelu(conv5)*0.2 + x  (+ optional outer RRDB residual)
    return conv(feats, layers[4]["w"], layers[4]["b"], lrelu=True,
                residuals=((RES_SCALE, x),) + tuple(extra_res))


def _rrdb(conv, x, rdbs):
    h = _rdb(conv, x, rdbs[0])
    h = _rdb(conv, h, rdbs[1])
    # third RDB also absorbs the RRDB residual:  (rdb3*0.2 + h)*... -> *0.2 + x
    return _rdb(conv, h, rdbs[2], extra_res=((RES_SCALE, x),))


def _forward(conv, params, x_nchw):
    x = jnp.transpose(x_nchw, (0, 2, 3, 1)).astype(CDT)          # NCHW -> NHWC
    x1 = conv([x], params["conv1"]["w"], params["conv1"]["b"])
    h = x1
    for rdbs in params["basic_block"]:
        h = _rrdb(conv, h, rdbs)
    # conv2 + residual x1 fused into the conv epilogue
    h = conv([h], params["conv2"]["w"], params["conv2"]["b"],
             residuals=((1.0, x1),))
    for up in params["upsample"]:
        # Conv -> PixelShuffle -> LeakyReLU == (Conv + LeakyReLU) -> PixelShuffle
        h = conv([h], up["w"], up["b"], lrelu=True)
        h = pixel_shuffle_nhwc(h, 2)
    h = conv([h], params["conv3"]["w"], params["conv3"]["b"], lrelu=True)
    h = conv([h], params["conv4"]["w"], params["conv4"]["b"])
    return jnp.transpose(h, (0, 3, 1, 2)).astype(jnp.float32)     # NHWC -> NCHW


@jax.jit
def esrgan_forward(params, x_nchw):
    return _forward(pallas_conv, params, x_nchw)


@jax.jit
def esrgan_forward_ref(params, x_nchw):
    return _forward(ref_conv, params, x_nchw)


# ----------------------------------------------------------------------------
# Deterministic parameter construction
# ----------------------------------------------------------------------------
def _init_conv(key, k, cin, cout, scale=0.05):
    kw, kb = jax.random.split(key)
    w = jax.random.normal(kw, (k, k, cin, cout), jnp.float32) * scale
    b = jax.random.normal(kb, (cout,), jnp.float32) * scale
    return {"w": w, "b": b}


def init_esrgan_params(key, in_channels, out_channels, nf, gc, scale_factor,
                       n_basic_block):
    keys = iter(jax.random.split(key, 4096))
    params = {}
    params["conv1"] = _init_conv(next(keys), 3, in_channels, nf)

    def init_rdb():
        layers = [_init_conv(next(keys), 3, nf + i * gc, gc) for i in range(4)]
        layers.append(_init_conv(next(keys), 3, nf + 4 * gc, nf))
        return layers

    params["basic_block"] = [
        [init_rdb() for _ in range(3)] for _ in range(n_basic_block)
    ]
    params["conv2"] = _init_conv(next(keys), 3, nf, nf)
    params["upsample"] = [_init_conv(next(keys), 1, nf, nf * 4)
                          for _ in range(scale_factor // 2)]
    params["conv3"] = _init_conv(next(keys), 3, nf, nf)
    params["conv4"] = _init_conv(next(keys), 3, nf, out_channels)
    return params


# ----------------------------------------------------------------------------
# Main: small, structurally faithful ESRGAN instantiation + checks
# ----------------------------------------------------------------------------
if __name__ == "__main__":
    in_channels, out_channels = 3, 3
    nf, gc = 16, 8
    scale_factor = 4
    n_basic_block = 2

    key = jax.random.PRNGKey(0)
    kp, kx = jax.random.split(key)
    params = init_esrgan_params(kp, in_channels, out_channels, nf, gc,
                                scale_factor, n_basic_block)

    N, H, W = 2, 8, 8
    x = jax.random.normal(kx, (N, in_channels, H, W), jnp.float32)   # NCHW

    # --- sanity check 1: plain conv + bias + LeakyReLU --------------------
    x_nhwc = jnp.transpose(x, (0, 2, 3, 1))

    @jax.jit
    def _check_plain(xn, w, b):
        return (pallas_conv([xn], w, b, lrelu=True),
                ref_conv([xn], w, b, lrelu=True))

    yk, yr = _check_plain(x_nhwc, params["conv1"]["w"], params["conv1"]["b"])
    assert jnp.allclose(yk.astype(jnp.float32), yr.astype(jnp.float32),
                        atol=2e-2, rtol=2e-2)

    # --- sanity check 2: fused concat + residual epilogue -----------------
    k2 = jax.random.PRNGKey(1)
    a = jax.random.normal(jax.random.fold_in(k2, 0), (N, H, W, nf), jnp.float32)
    f1 = jax.random.normal(jax.random.fold_in(k2, 1), (N, H, W, gc), jnp.float32)
    rres = jax.random.normal(jax.random.fold_in(k2, 2), (N, H, W, gc), jnp.float32)
    wf = jax.random.normal(jax.random.fold_in(k2, 3), (3, 3, nf + gc, gc),
                           jnp.float32) * 0.05
    bf = jax.random.normal(jax.random.fold_in(k2, 4), (gc,), jnp.float32) * 0.05

    @jax.jit
    def _check_fused(a, f1, rres, wf, bf):
        kw = dict(lrelu=True, residuals=((RES_SCALE, rres),))
        return (pallas_conv([a, f1], wf, bf, **kw),
                ref_conv([a, f1], wf, bf, **kw))

    yk, yr = _check_fused(a, f1, rres, wf, bf)
    assert jnp.allclose(yk.astype(jnp.float32), yr.astype(jnp.float32),
                        atol=2e-2, rtol=2e-2)

    # --- full forward: Pallas vs pure-JAX reference (same dtype recipe) ---
    out = jax.block_until_ready(esrgan_forward(params, x))
    out_ref = jax.block_until_ready(esrgan_forward_ref(params, x))
    assert out.shape == (N, out_channels, H * scale_factor, W * scale_factor)
    assert jnp.all(jnp.isfinite(out))
    err = jnp.max(jnp.abs(out - out_ref))
    assert err < 5e-2, f"max abs diff vs reference: {err}"

    print("KERNEL_OK")
</pallas_src>

<mosaic_0001>
module attributes {stable_mosaic.version = 11 : i64} {
  func.func @kernel(%arg0: i32, %arg1: memref<1x8x8x3xbf16, #tpu.memory_space<vmem>>, %arg2: memref<3x3x3x16xbf16, #tpu.memory_space<vmem>>, %arg3: memref<1x16xf32, #tpu.memory_space<vmem>>, %arg4: memref<1x8x8x16xbf16, #tpu.memory_space<vmem>>, %arg5: memref<10x10x3xbf16, #tpu.memory_space<vmem>>) attributes {dimension_semantics = [#tpu.dimension_semantics<parallel>], iteration_bounds = array<i64: 2>, scalar_prefetch = 0 : i64, scratch_operands = 1 : i64, tpu.core_type = #tpu.core_type<tc>, window_params = [{transform_indices = @transform_0, window_bounds = array<i64: 1, 8, 8, 3>}, {pipeline_mode = #tpu.pipeline_mode<synchronous>, transform_indices = @transform_1, window_bounds = array<i64: 3, 3, 3, 16>}, {pipeline_mode = #tpu.pipeline_mode<synchronous>, transform_indices = @transform_2, window_bounds = array<i64: 1, 16>}, {transform_indices = @transform_3, window_bounds = array<i64: 1, 8, 8, 16>}]} {
    %cst = arith.constant 0.000000e+00 : bf16
    %0 = vector.broadcast %cst : bf16 to vector<10x10x3xbf16>
    %c0 = arith.constant 0 : index
    %c0_0 = arith.constant 0 : index
    %c0_1 = arith.constant 0 : index
    %1 = vector.load %arg5[%c0, %c0_0, %c0_1] : memref<10x10x3xbf16, #tpu.memory_space<vmem>>, vector<10x10x3xbf16>
    tpu.vector_store %arg5[%c0, %c0_0, %c0_1], %0 {strides = array<i32>} : memref<10x10x3xbf16, #tpu.memory_space<vmem>>, vector<10x10x3xbf16>,
    %c0_2 = arith.constant 0 : index
    %c0_3 = arith.constant 0 : index
    %c0_4 = arith.constant 0 : index
    %c0_5 = arith.constant 0 : index
    %2 = vector.load %arg1[%c0_2, %c0_3, %c0_4, %c0_5] : memref<1x8x8x3xbf16, #tpu.memory_space<vmem>>, vector<1x8x8x3xbf16>
    %3 = vector.shape_cast %2 : vector<1x8x8x3xbf16> to vector<8x8x3xbf16>
    %c1 = arith.constant 1 : index
    %c1_6 = arith.constant 1 : index
    %c0_7 = arith.constant 0 : index
    %4 = vector.load %arg5[%c1, %c1_6, %c0_7] : memref<10x10x3xbf16, #tpu.memory_space<vmem>>, vector<8x8x3xbf16>
    tpu.vector_store %arg5[%c1, %c1_6, %c0_7], %3 {strides = array<i32>} : memref<10x10x3xbf16, #tpu.memory_space<vmem>>, vector<8x8x3xbf16>,
    %c0_8 = arith.constant 0 : index
    %c0_9 = arith.constant 0 : index
    %c0_10 = arith.constant 0 : index
    %c0_11 = arith.constant 0 : index
    %5 = vector.load %arg2[%c0_8, %c0_9, %c0_10, %c0_11] : memref<3x3x3x16xbf16, #tpu.memory_space<vmem>>, vector<3x3x3x16xbf16>
    %cst_12 = arith.constant 0.000000e+00 : f32
    %6 = vector.broadcast %cst_12 : f32 to vector<64x16xf32>
    %c0_13 = arith.constant 0 : index
    %c0_14 = arith.constant 0 : index
    %c0_15 = arith.constant 0 : index
    %7 = vector.load %arg5[%c0_13, %c0_14, %c0_15] : memref<10x10x3xbf16, #tpu.memory_space<vmem>>, vector<8x8x3xbf16>
    %8 = vector.shape_cast %7 : vector<8x8x3xbf16> to vector<64x3xbf16>
    %9 = vector.extract_strided_slice %5 {offsets = [0, 0, 0, 0], sizes = [1, 1, 3, 16], strides = [1, 1, 1, 1]} : vector<3x3x3x16xbf16> to vector<1x1x3x16xbf16>
    %10 = vector.shape_cast %9 : vector<1x1x3x16xbf16> to vector<3x16xbf16>
    %cst_16 = arith.constant dense<0.000000e+00> : vector<64x16xf32>
    %11 = tpu.matmul %8, %10, %cst_16 {dimension_numbers = #tpu.dot_dimension_numbers<[1], [0], [0], [1], [0, 0, 1, 1], [], []>} : vector<64x3xbf16>, vector<3x16xbf16>, vector<64x16xf32> -> vector<64x16xf32>
    %12 = arith.addf %6, %11 : vector<64x16xf32>
    %c0_17 = arith.constant 0 : index
    %c1_18 = arith.constant 1 : index
    %c0_19 = arith.constant 0 : index
    %13 = vector.load %arg5[%c0_17, %c1_18, %c0_19] : memref<10x10x3xbf16, #tpu.memory_space<vmem>>, vector<8x8x3xbf16>
    %14 = vector.shape_cast %13 : vector<8x8x3xbf16> to vector<64x3xbf16>
    %15 = vector.extract_strided_slice %5 {offsets = [0, 1, 0, 0], sizes = [1, 1, 3, 16], strides = [1, 1, 1, 1]} : vector<3x3x3x16xbf16> to vector<1x1x3x16xbf16>
    %16 = vector.shape_cast %15 : vector<1x1x3x16xbf16> to vector<3x16xbf16>
    %cst_20 = arith.constant dense<0.000000e+00> : vector<64x16xf32>
    %17 = tpu.matmul %14, %16, %cst_20 {dimension_numbers = #tpu.dot_dimension_numbers<[1], [0], [0], [1], [0, 0, 1, 1], [], []>} : vector<64x3xbf16>, vector<3x16xbf16>, vector<64x16xf32> -> vector<64x16xf32>
    %18 = arith.addf %12, %17 : vector<64x16xf32>
    %c0_21 = arith.constant 0 : index
    %c2 = arith.constant 2 : index
    %c0_22 = arith.constant 0 : index
    %19 = vector.load %arg5[%c0_21, %c2, %c0_22] : memref<10x10x3xbf16, #tpu.memory_space<vmem>>, vector<8x8x3xbf16>
    %20 = vector.shape_cast %19 : vector<8x8x3xbf16> to vector<64x3xbf16>
    %21 = vector.extract_strided_slice %5 {offsets = [0, 2, 0, 0], sizes = [1, 1, 3, 16], strides = [1, 1, 1, 1]} : vector<3x3x3x16xbf16> to vector<1x1x3x16xbf16>
    %22 = vector.shape_cast %21 : vector<1x1x3x16xbf16> to vector<3x16xbf16>
    %cst_23 = arith.constant dense<0.000000e+00> : vector<64x16xf32>
    %23 = tpu.matmul %20, %22, %cst_23 {dimension_numbers = #tpu.dot_dimension_numbers<[1], [0], [0], [1], [0, 0, 1, 1], [], []>} : vector<64x3xbf16>, vector<3x16xbf16>, vector<64x16xf32> -> vector<64x16xf32>
    %24 = arith.addf %18, %23 : vector<64x16xf32>
    %c1_24 = arith.constant 1 : index
    %c0_25 = arith.constant 0 : index
    %c0_26 = arith.constant 0 : index
    %25 = vector.load %arg5[%c1_24, %c0_25, %c0_26] : memref<10x10x3xbf16, #tpu.memory_space<vmem>>, vector<8x8x3xbf16>
    %26 = vector.shape_cast %25 : vector<8x8x3xbf16> to vector<64x3xbf16>
    %27 = vector.extract_strided_slice %5 {offsets = [1, 0, 0, 0], sizes = [1, 1, 3, 16], strides = [1, 1, 1, 1]} : vector<3x3x3x16xbf16> to vector<1x1x3x16xbf16>
    %28 = vector.shape_cast %27 : vector<1x1x3x16xbf16> to vector<3x16xbf16>
    %cst_27 = arith.constant dense<0.000000e+00> : vector<64x16xf32>
    %29 = tpu.matmul %26, %28, %cst_27 {dimension_numbers = #tpu.dot_dimension_numbers<[1], [0], [0], [1], [0, 0, 1, 1], [], []>} : vector<64x3xbf16>, vector<3x16xbf16>, vector<64x16xf32> -> vector<64x16xf32>
    %30 = arith.addf %24, %29 : vector<64x16xf32>
    %c1_28 = arith.constant 1 : index
    %c1_29 = arith.constant 1 : index
    %c0_30 = arith.constant 0 : index
    %31 = vector.load %arg5[%c1_28, %c1_29, %c0_30] : memref<10x10x3xbf16, #tpu.memory_space<vmem>>, vector<8x8x3xbf16>
    %32 = vector.shape_cast %31 : vector<8x8x3xbf16> to vector<64x3xbf16>
    %33 = vector.extract_strided_slice %5 {offsets = [1, 1, 0, 0], sizes = [1, 1, 3, 16], strides = [1, 1, 1, 1]} : vector<3x3x3x16xbf16> to vector<1x1x3x16xbf16>
    %34 = vector.shape_cast %33 : vector<1x1x3x16xbf16> to vector<3x16xbf16>
    %cst_31 = arith.constant dense<0.000000e+00> : vector<64x16xf32>
    %35 = tpu.matmul %32, %34, %cst_31 {dimension_numbers = #tpu.dot_dimension_numbers<[1], [0], [0], [1], [0, 0, 1, 1], [], []>} : vector<64x3xbf16>, vector<3x16xbf16>, vector<64x16xf32> -> vector<64x16xf32>
    %36 = arith.addf %30, %35 : vector<64x16xf32>
    %c1_32 = arith.constant 1 : index
    %c2_33 = arith.constant 2 : index
    %c0_34 = arith.constant 0 : index
    %37 = vector.load %arg5[%c1_32, %c2_33, %c0_34] : memref<10x10x3xbf16, #tpu.memory_space<vmem>>, vector<8x8x3xbf16>
    %38 = vector.shape_cast %37 : vector<8x8x3xbf16> to vector<64x3xbf16>
    %39 = vector.extract_strided_slice %5 {offsets = [1, 2, 0, 0], sizes = [1, 1, 3, 16], strides = [1, 1, 1, 1]} : vector<3x3x3x16xbf16> to vector<1x1x3x16xbf16>
    %40 = vector.shape_cast %39 : vector<1x1x3x16xbf16> to vector<3x16xbf16>
    %cst_35 = arith.constant dense<0.000000e+00> : vector<64x16xf32>
    %41 = tpu.matmul %38, %40, %cst_35 {dimension_numbers = #tpu.dot_dimension_numbers<[1], [0], [0], [1], [0, 0, 1, 1], [], []>} : vector<64x3xbf16>, vector<3x16xbf16>, vector<64x16xf32> -> vector<64x16xf32>
    %42 = arith.addf %36, %41 : vector<64x16xf32>
    %c2_36 = arith.constant 2 : index
    %c0_37 = arith.constant 0 : index
    %c0_38 = arith.constant 0 : index
    %43 = vector.load %arg5[%c2_36, %c0_37, %c0_38] : memref<10x10x3xbf16, #tpu.memory_space<vmem>>, vector<8x8x3xbf16>
    %44 = vector.shape_cast %43 : vector<8x8x3xbf16> to vector<64x3xbf16>
    %45 = vector.extract_strided_slice %5 {offsets = [2, 0, 0, 0], sizes = [1, 1, 3, 16], strides = [1, 1, 1, 1]} : vector<3x3x3x16xbf16> to vector<1x1x3x16xbf16>
    %46 = vector.shape_cast %45 : vector<1x1x3x16xbf16> to vector<3x16xbf16>
    %cst_39 = arith.constant dense<0.000000e+00> : vector<64x16xf32>
    %47 = tpu.matmul %44, %46, %cst_39 {dimension_numbers = #tpu.dot_dimension_numbers<[1], [0], [0], [1], [0, 0, 1, 1], [], []>} : vector<64x3xbf16>, vector<3x16xbf16>, vector<64x16xf32> -> vector<64x16xf32>
    %48 = arith.addf %42, %47 : vector<64x16xf32>
    %c2_40 = arith.constant 2 : index
    %c1_41 = arith.constant 1 : index
    %c0_42 = arith.constant 0 : index
    %49 = vector.load %arg5[%c2_40, %c1_41, %c0_42] : memref<10x10x3xbf16, #tpu.memory_space<vmem>>, vector<8x8x3xbf16>
    %50 = vector.shape_cast %49 : vector<8x8x3xbf16> to vector<64x3xbf16>
    %51 = vector.extract_strided_slice %5 {offsets = [2, 1, 0, 0], sizes = [1, 1, 3, 16], strides = [1, 1, 1, 1]} : vector<3x3x3x16xbf16> to vector<1x1x3x16xbf16>
    %52 = vector.shape_cast %51 : vector<1x1x3x16xbf16> to vector<3x16xbf16>
    %cst_43 = arith.constant dense<0.000000e+00> : vector<64x16xf32>
    %53 = tpu.matmul %50, %52, %cst_43 {dimension_numbers = #tpu.dot_dimension_numbers<[1], [0], [0], [1], [0, 0, 1, 1], [], []>} : vector<64x3xbf16>, vector<3x16xbf16>, vector<64x16xf32> -> vector<64x16xf32>
    %54 = arith.addf %48, %53 : vector<64x16xf32>
    %c2_44 = arith.constant 2 : index
    %c2_45 = arith.constant 2 : index
    %c0_46 = arith.constant 0 : index
    %55 = vector.load %arg5[%c2_44, %c2_45, %c0_46] : memref<10x10x3xbf16, #tpu.memory_space<vmem>>, vector<8x8x3xbf16>
    %56 = vector.shape_cast %55 : vector<8x8x3xbf16> to vector<64x3xbf16>
    %57 = vector.extract_strided_slice %5 {offsets = [2, 2, 0, 0], sizes = [1, 1, 3, 16], strides = [1, 1, 1, 1]} : vector<3x3x3x16xbf16> to vector<1x1x3x16xbf16>
    %58 = vector.shape_cast %57 : vector<1x1x3x16xbf16> to vector<3x16xbf16>
    %cst_47 = arith.constant dense<0.000000e+00> : vector<64x16xf32>
    %59 = tpu.matmul %56, %58, %cst_47 {dimension_numbers = #tpu.dot_dimension_numbers<[1], [0], [0], [1], [0, 0, 1, 1], [], []>} : vector<64x3xbf16>, vector<3x16xbf16>, vector<64x16xf32> -> vector<64x16xf32>
    %60 = arith.addf %54, %59 : vector<64x16xf32>
    %c0_48 = arith.constant 0 : index
    %c0_49 = arith.constant 0 : index
    %61 = vector.load %arg3[%c0_48, %c0_49] : memref<1x16xf32, #tpu.memory_space<vmem>>, vector<1x16xf32>
    %62 = vector.broadcast %61 : vector<1x16xf32> to vector<64x16xf32>
    %63 = arith.addf %60, %62 : vector<64x16xf32>
    %cst_50 = arith.constant 0.000000e+00 : f32
    %64 = vector.broadcast %cst_50 : f32 to vector<64x16xf32>
    %65 = arith.cmpf oge, %63, %64 : vector<64x16xf32>
    %cst_51 = arith.constant 0.00999999977 : f32
    %66 = vector.broadcast %cst_51 : f32 to vector<64x16xf32>
    %67 = arith.mulf %63, %66 : vector<64x16xf32>
    %68 = arith.select %65, %63, %67 : vector<64x16xi1>, vector<64x16xf32>
    %69 = vector.shape_cast %68 : vector<64x16xf32> to vector<8x8x16xf32>
    %70 = arith.truncf %69 : vector<8x8x16xf32> to vector<8x8x16xbf16>
    %c0_52 = arith.constant 0 : index
    %c0_53 = arith.constant 0 : index
    %c0_54 = arith.constant 0 : index
    %c0_55 = arith.constant 0 : index
    %71 = vector.load %arg4[%c0_52, %c0_53, %c0_54, %c0_55] : memref<1x8x8x16xbf16, #tpu.memory_space<vmem>>, vector<1x8x8x16xbf16>
    %72 = vector.shape_cast %71 : vector<1x8x8x16xbf16> to vector<8x8x16xbf16>
    %73 = vector.shape_cast %70 : vector<8x8x16xbf16> to vector<1x8x8x16xbf16>
    tpu.vector_store %arg4[%c0_52, %c0_53, %c0_54, %c0_55], %73 {strides = array<i32>} : memref<1x8x8x16xbf16, #tpu.memory_space<vmem>>, vector<1x8x8x16xbf16>,
    return
  }
  func.func @transform_0(%arg0: i32) -> (i32, i32, i32, i32) {
    %c0_i32 = arith.constant 0 : i32
    %c0_i32_0 = arith.constant 0 : i32
    %c0_i32_1 = arith.constant 0 : i32
    %c0_i32_2 = arith.constant 0 : i32
    return %arg0, %c0_i32, %c0_i32_0, %c0_i32_1 : i32, i32, i32, i32
  }
  func.func @transform_1(%arg0: i32) -> (i32, i32, i32, i32) {
    %c0_i32 = arith.constant 0 : i32
    %c0_i32_0 = arith.constant 0 : i32
    %c0_i32_1 = arith.constant 0 : i32
    %c0_i32_2 = arith.constant 0 : i32
    %c0_i32_3 = arith.constant 0 : i32
    return %c0_i32, %c0_i32_0, %c0_i32_1, %c0_i32_2 : i32, i32, i32, i32
  }
  func.func @transform_2(%arg0: i32) -> (i32, i32) {
    %c0_i32 = arith.constant 0 : i32
    %c0_i32_0 = arith.constant 0 : i32
    %c0_i32_1 = arith.constant 0 : i32
    return %c0_i32, %c0_i32_0 : i32, i32
  }
  func.func @transform_3(%arg0: i32) -> (i32, i32, i32, i32) {
    %c0_i32 = arith.constant 0 : i32
    %c0_i32_0 = arith.constant 0 : i32
    %c0_i32_1 = arith.constant 0 : i32
    %c0_i32_2 = arith.constant 0 : i32
    return %arg0, %c0_i32, %c0_i32_0, %c0_i32_1 : i32, i32, i32, i32
  }
}

</mosaic_0001>

<bundles_post_ra>
// kernel: _check_plain.1
= control target key start
LH: loop header
LB: loop body
LE: loop exit
PB: predicated region body
PF: predicated region fallthrough
CT: control target
= control target key end

     0   :  { %8 = vsyncpa [#allocation4], 0  ;;  %s3038_s0 = inlined_call_operand.vmem [shape: bf16[2,8,8,3], index: 0, kind: input, shape index: {}]   ;;  %s3039_s1 = inlined_call_operand.vmem [shape: bf16[3,3,3,16], index: 1, kind: input, shape index: {}]   ;;  %s3040_s2 = inlined_call_operand.vmem [shape: f32[1,16], index: 2, kind: input, shape index: {}]   ;;  %s3041_s3 = inlined_call_operand.hbm [shape: bf16[2,8,8,16], index: 3, kind: output, shape index: {}]  }
   0x1   :  { %10 = vsyncpa [#allocation4 + $0x1], 0  ;;  %s2419_s12 = smov 0   ;;  %s2421_s13 = smov 0  }
   0x2   :  { %s2423_s14 = smov 0   ;;  %s2425_s15 = smov 0  }
   0x3 LB: > { %s2440_s16 = sadd.s32 4294967295, %s2392_s15   ;;  %s1964_s17 = sadd.s32 4294967294, %s2392_s15   ;;  %s2392_s15 = sphi %s2425_s15, %s3055_s15   ;;  %s2388_s14 = sphi %s2423_s14, %s3054_s14   ;;  %s2384_s13 = sphi %s2421_s13, %s3053_s13   ;;  %s2380_s12 = sphi %s2419_s12, %s3052_s12  }
   0x4   : > { %s2444_s18 = sadd.s32 1, %s2392_s15   ;;  %s91_s19 = sadd.s32 1, %s2388_s14 }
   0x5   : > { %s88_s20 = ssub.s32 %s2392_s15, %s2444_s18  ;;  %p101_p0 = scmp.ne.s32.totalorder %s2388_s14, %s2384_s13 }
   0x6   : > { %p89_p1 = scmp.eq.s32.totalorder %s88_s20, 0  ;;  %p102_p2 = scmp.eq.s32.totalorder %s2440_s16, 1 }
   0x7   : > { %p107_p3 = scmp.ne.s32.totalorder %s2384_s13, %s2380_s12  ;;  %p108_p4 = scmp.eq.s32.totalorder %s1964_s17, 1 }
   0x8   : > { %s2455_s21 = scalar_select %p89_p1, %s2388_s14, %s91_s19  }
   0x9   : > { %p2457_p5 = por %p102_p2, %p101_p0  ;;  %p2461_p6 = por %p108_p4, %p107_p3 }
   0xa   : > { %p1967_p7 = scmp.ge.s32.totalorder %s2392_s15, 1  ;;  %p140_p8 = scmp.lt.s32.totalorder %s2392_s15, 3 }
   0xc   : > { %p141_p9 = pnand %p1967_p7, %p140_p8 }
   0xd   : > { %v336_v0 = vld [vmem:[%s3039_s1 + $0x2] sm:$0x3] (!%p141_p9)  ;;  %vm500_vm0 = vcmask (!%p141_p9), 1040384   ;;  %vm501_vm1 = vcmask (!%p141_p9), 1041408   ;;  %p164_p10 = scmp.lt.s32.totalorder (!%p141_p9), %s2440_s16, 1  ;;  %v2394_v1 = vmov (!%p141_p9), 65535  }
   0xe   : > { %144 = sbr.rel (%p141_p9) target bundleno = 386 (0x182), region = 32  ;;  %v502_v2 = vsel (!%p141_p9), %vm500_vm0, 4294967295, %v2394_v1  ;;  %v339_v3 = vld [vmem:[%s3039_s1 + $0x8] sm:$0x3] (!%p141_p9)  ;;  %vm170_vm2 = vcmask (!%p141_p9), 19456   ;;  %vm172_vm3 = vcmask (!%p141_p9), 16384  }
   0xf   : > { %v2474_v4 = vsel (!%p141_p9), %vm501_vm1, %v502_v2, 0  ;;  %v2395_v5 = vmov (!%p141_p9), 0   ;;  %v335_v8 = vld [vmem:[%s3039_s1] sm:$0x3] (!%p141_p9)  ;;  %v340_v10 = vld [vmem:[%s3039_s1 + $0xa] sm:$0x3] (!%p141_p9) }
  0x10   : > { %171 = vst.msk [vmem:[#allocation2] sm:$0xf] (!%p141_p9), %vm170_vm2, %v2395_v5  ;;  %174 = vst.msk [vmem:[#allocation2 + $0x8] sm:$0xf] (!%p141_p9), %vm170_vm2, %v2395_v5  ;;  %v505_v6 = vand.u32 (!%p141_p9), %v2474_v4, %v336_v0  ;;  %v2501_v7 = vand.u32 (!%p141_p9), %v2474_v4, %v339_v3  ;;  %v2508_v9 = vand.u32 (!%p141_p9), %v2474_v4, %v335_v8  ;;  %vm282_vm4 = vsmask.f32 (!%p141_p9), 7938 }
  0x11   : > { %173 = vst.msk [vmem:[#allocation2 + $0x4] sm:$0x1] (!%p141_p9), %vm172_vm3, %v2395_v5  ;;  %175 = vst.msk [vmem:[#allocation2 + $0xc] sm:$0x1] (!%p141_p9), %vm172_vm3, %v2395_v5  ;;  %vm288_vm5 = vsmask.f32 (!%p141_p9), 256  ;;  %v2520_v11 = vand.u32 (!%p141_p9), %v2474_v4, %v340_v10 }
  0x12   : > { %176 = vst.msk [vmem:[#allocation2 + $0x10] sm:$0xf] (!%p141_p9), %vm170_vm2, %v2395_v5  ;;  %178 = vst.msk [vmem:[#allocation2 + $0x18] sm:$0xf] (!%p141_p9), %vm170_vm2, %v2395_v5  ;;  %2120 = vmatprep.subr.bf16.mxu1 (!%p141_p9), %v505_v6  ;;  %2160 = vmatprep.subr.bf16.mxu0 (!%p141_p9), %v2501_v7  ;;  %vm360_vm8 = vsmask.f32 (!%p141_p9), 3328 }
  0x13   : > { %177 = vst.msk [vmem:[#allocation2 + $0x14] sm:$0x1] (!%p141_p9), %vm172_vm3, %v2395_v5  ;;  %179 = vst.msk [vmem:[#allocation2 + $0x1c] sm:$0x1] (!%p141_p9), %vm172_vm3, %v2395_v5  ;;  %2121 = vmatpush3.bf16.msra.mxu1 (!%p141_p9), %v505_v6  ;;  %2161 = vmatpush3.bf16.msra.mxu0 (!%p141_p9), %v2501_v7  ;;  %vm361_vm9 = vsmask.f32 (!%p141_p9), 7440 }
  0x14   : > { %180 = vst.msk [vmem:[#allocation2 + $0x20] sm:$0xf] (!%p141_p9), %vm170_vm2, %v2395_v5  ;;  %182 = vst.msk [vmem:[#allocation2 + $0x28] sm:$0xf] (!%p141_p9), %vm170_vm2, %v2395_v5  ;;  %2130 = vmatprep.subr.bf16.mxu1 (!%p141_p9), %v2508_v9  ;;  %2170 = vmatprep.subr.bf16.mxu0 (!%p141_p9), %v2520_v11  ;;  %v341_v63 = vld [vmem:[%s3039_s1 + $0xc] sm:$0x3] (!%p141_p9) }
  0x15   : > { %s2477_s28 = scalar_select %p164_p10, %s2440_s16, 1  ;;  %181 = vst.msk [vmem:[#allocation2 + $0x24] sm:$0x1] %vm172_vm3, %v2395_v5  ;;  %183 = vst.msk [vmem:[#allocation2 + $0x2c] sm:$0x1] %vm172_vm3, %v2395_v5  ;;  %vm487_vm11 = vcmask 23552  }
  0x16   : > { %184 = vst.msk [vmem:[#allocation2 + $0x30] sm:$0xf] %vm170_vm2, %v2395_v5  ;;  %186 = vst.msk [vmem:[#allocation2 + $0x38] sm:$0xf] %vm170_vm2, %v2395_v5  ;;  %v337_v6 = vld [vmem:[%s3039_s1 + $0x4] sm:$0x3] }
  0x17   : > { %185 = vst.msk [vmem:[#allocation2 + $0x34] sm:$0x1] %vm172_vm3, %v2395_v5  ;;  %187 = vst.msk [vmem:[#allocation2 + $0x3c] sm:$0x1] %vm172_vm3, %v2395_v5  ;;  %s2073_s4 = sshll.u32 %s2477_s28, 5  ;;  %vm696_vm12 = vcmask 1042432  }
  0x18   : > { %188 = vst.msk [vmem:[#allocation2 + $0x40] sm:$0xf] %vm170_vm2, %v2395_v5  ;;  %190 = vst.msk [vmem:[#allocation2 + $0x48] sm:$0xf] %vm170_vm2, %v2395_v5  ;;  %s2517_s9 = scalar_lea.vmem %s3038_s0, %s2073_s4  ;;  %v284_v24 = vld [vmem:[#allocation2 + $0x8] sm:$0xf] }
  0x19   : > { %189 = vst.msk [vmem:[#allocation2 + $0x44] sm:$0x1] %vm172_vm3, %v2395_v5  ;;  %191 = vst.msk [vmem:[#allocation2 + $0x4c] sm:$0x1] %vm172_vm3, %v2395_v5  ;;  %v192_v12 = vld [vmem:[%s2517_s9] sm:$0xf] }
  0x1a   : > { %v193_v13 = vld [vmem:[%s2517_s9 + $0x4] sm:$0xf]  ;;  %v194_v14 = vld [vmem:[%s2517_s9 + $0x8] sm:$0xf]  ;;  %v201_v15 = vshrl.u32 %v192_v12, 16  ;;  %v204_v16 = vshll.u32 %v192_v12, 16  ;;  %vm2530_vm6 = vmand %vm170_vm2, %vm282_vm4 }
  0x1b   : > { %v209_v17 = vshrl.u32 %v193_v13, 16  ;;  %v195_v18 = vld [vmem:[%s2517_s9 + $0xc] sm:$0xf]  ;;  %v212_v20 = vshll.u32 %v193_v13, 16  ;;  %v217_v21 = vshrl.u32 %v194_v14, 16  ;;  %vm2536_vm7 = vmand %vm172_vm3, %vm288_vm5  ;;  %v220_v38 = vshll.u32 %v194_v14, 16 }
  0x1c   : > { %v225_v22 = vshrl.u32 %v195_v18, 16  ;;  %v203_v23 = vrot.slane %v201_v15, 7  ;;  %v290_v26 = vld [vmem:[#allocation2 + $0xc] sm:$0x1]  ;;  %v2540_v28 = vld [vmem:[#allocation2] sm:$0xf]  ;;  %vm2580_vm10 = vmor %vm360_vm8, %vm361_vm9 }
  0x1d   : > { %v211_v27 = vrot.slane %v209_v17, 7  ;;  %v2542_v29 = vld [vmem:[#allocation2 + $0x4] sm:$0x1]  ;;  %v293_v30 = vld [vmem:[#allocation2 + $0x10] sm:$0xf]  ;;  %v364_v33 = vshrl.u32 %v2540_v28, 16 }
  0x1e   : > { %v206_v31 = vor.u32 %v204_v16, %v203_v23  ;;  %v207_v32 = vrot.slane %v203_v23, 4  ;;  %v367_v34 = vshll.u32 %v2540_v28, 16  ;;  %v296_v35 = vld [vmem:[#allocation2 + $0x14] sm:$0x1]  ;;  %v228_v39 = vshll.u32 %v195_v18, 16  ;;  %s161_s4 = sand.u32 1, %s2384_s13  }
  0x1f   : > { %v214_v36 = vor.u32 %v212_v20, %v211_v27  ;;  %v215_v37 = vrot.slane %v211_v27, 4  ;;  %v196_v40 = vld [vmem:[%s2517_s9 + $0x10] sm:$0xf]  ;;  %v366_v43 = vrot.slane %v364_v33, 4  ;;  %v373_v45 = vshll.u32 %v2542_v29, 16  ;;  %s1968_s5 = sshll.u32 %s161_s4, 5 }
  0x20   : > { %v285_v41 = vsel %vm2530_vm6, %v206_v31, %v284_v24  ;;  %v291_v42 = vsel %vm2536_vm7, %v207_v32, %v290_v26  ;;  %v369_v44 = vrot.slane %v367_v34, 5  ;;  %v219_v48 = vrot.slane %v217_v21, 7  ;;  %v299_v49 = vld [vmem:[#allocation2 + $0x18] sm:$0xf]  ;;  %v302_v50 = vld [vmem:[#allocation2 + $0x1c] sm:$0x1] }
  0x21   : > { %286 = vst [vmem:[#allocation2 + $0x8] sm:$0xf] %v285_v41  ;;  %292 = vst [vmem:[#allocation2 + $0xc] sm:$0x1] %v291_v42  ;;  %v294_v46 = vsel %vm2530_vm6, %v214_v36, %v293_v30  ;;  %v297_v47 = vsel %vm2536_vm7, %v215_v37, %v296_v35  ;;  %v227_v52 = vrot.slane %v225_v22, 7  ;;  %v233_v54 = vshrl.u32 %v196_v40, 16 }
  0x22   : > { %v370_v51 = vor.u32 %v369_v44, %v366_v43  ;;  %295 = vst [vmem:[#allocation2 + $0x10] sm:$0xf] %v294_v46  ;;  %298 = vst [vmem:[#allocation2 + $0x14] sm:$0x1] %v297_v47  ;;  %v305_v53 = vld [vmem:[#allocation2 + $0x20] sm:$0xf]  ;;  %v222_v56 = vor.u32 %v220_v38, %v219_v48  ;;  %v2593_v26 = vand.u32 %v2474_v4, %v341_v63 }
  0x23   : > { %v236_v55 = vshll.u32 %v196_v40, 16  ;;  %v223_v57 = vrot.slane %v219_v48, 4  ;;  %v308_v58 = vld [vmem:[#allocation2 + $0x24] sm:$0x1]  ;;  %v197_v59 = vld [vmem:[%s2517_s9 + $0x14] sm:$0xf]  ;;  %v230_v60 = vor.u32 %v228_v39, %v227_v52  ;;  %v2596_v27 = vand.u32 %v2474_v4, %v337_v6 }
  0x24   : > { %v231_v61 = vrot.slane %v227_v52, 4  ;;  %v235_v62 = vrot.slane %v233_v54, 7  ;;  %v2560_v0 = vrot.slane %v373_v45, 5  ;;  %v300_v1 = vsel %vm2530_vm6, %v222_v56, %v299_v49  ;;  %v311_v3 = vld [vmem:[#allocation2 + $0x28] sm:$0xf]  ;;  %s2968_s6 = scalar_lea.vmem [#allocation3], %s1968_s5 }
  0x25   : > { %v303_v2 = vsel %vm2536_vm7, %v223_v57, %v302_v50  ;;  %v241_v5 = vshrl.u32 %v197_v59, 16  ;;  %v2569_v8 = vrot.slane %v370_v51, 4  ;;  %301 = vst [vmem:[#allocation2 + $0x18] sm:$0xf] %v300_v1  ;;  %v306_v10 = vsel %vm2530_vm6, %v230_v60, %v305_v53  ;;  %v2576_v14 = vld [vmem:[%s2517_s9 + $0x18] sm:$0xf] }
  0x26   : > { %304 = vst [vmem:[#allocation2 + $0x1c] sm:$0x1] %v303_v2  ;;  %v309_v12 = vsel %vm2536_vm7, %v231_v61, %v308_v58  ;;  %v238_v13 = vor.u32 %v236_v55, %v235_v62  ;;  %307 = vst [vmem:[#allocation2 + $0x20] sm:$0xf] %v306_v10  ;;  %v239_v16 = vrot.slane %v235_v62, 4  ;;  %v244_v20 = vshll.u32 %v197_v59, 16 }
  0x27   : > { %310 = vst [vmem:[#allocation2 + $0x24] sm:$0x1] %v309_v12  ;;  %v314_v17 = vld [vmem:[#allocation2 + $0x2c] sm:$0x1]  ;;  %v2584_v18 = vrot.slane %v241_v5, 7  ;;  %v249_v34 = vshrl.u32 %v2576_v14, 16  ;;  %v376_v35 = vsel %vm2580_vm10, %v2569_v8, %v2560_v0 }
  0x28   : > { %v2586_v21 = vld [vmem:[#allocation2 + $0x8] sm:$0xf]  ;;  %v2588_v22 = vld [vmem:[#allocation2 + $0xc] sm:$0x1]  ;;  %v312_v24 = vsel %vm2530_vm6, %v238_v13, %v311_v3  ;;  %v315_v40 = vsel %vm2536_vm7, %v239_v16, %v314_v17  ;;  %v252_v44 = vshll.u32 %v2576_v14, 16  ;;  %vm697_vm13 = vcmask 1046532  }
  0x29   : > { %v947_v23 = vld [vmem:[#allocation2 + $0x8] sm:$0xf]  ;;  %v378_v30 = vshrl.u32 %v2586_v21, 16  ;;  %v381_v31 = vshll.u32 %v2586_v21, 16  ;;  %v387_v32 = vshll.u32 %v2588_v22, 16  ;;  %v2622_v55 = vor.u32 %v244_v20, %v2584_v18  ;;  %vm2683_vm14 = vmor %vm696_vm12, %vm697_vm13  ;;  %s2074_s7 = sshll.u32 %s2440_s16, 9 }
  0x2a   : > { %v2601_v33 = vld [vmem:[#allocation2 + $0xc] sm:$0x1]  ;;  %313 = vst [vmem:[#allocation2 + $0x28] sm:$0xf] %v312_v24  ;;  %v949_v36 = vld [vmem:[#allocation2 + $0x10] sm:$0xf]  ;;  %s2985_s11 = scalar_lea.hbm %s3041_s3, %s2074_s7 }
  0x2b   : > { %v2608_v37 = vld [vmem:[#allocation2 + $0x14] sm:$0x1]  ;;  %v964_v38 = vshrl.u32 %v947_v23, 16  ;;  %v967_v39 = vshll.u32 %v947_v23, 16  ;;  %v380_v41 = vrot.slane %v378_v30, 4  ;;  %v383_v42 = vrot.slane %v381_v31, 5 }
  0x2c   : > { %v973_v43 = vshll.u32 %v2601_v33, 16  ;;  %316 = vst [vmem:[#allocation2 + $0x2c] sm:$0x1] %v315_v40  ;;  %v978_v47 = vshrl.u32 %v949_v36, 16  ;;  %v981_v48 = vshll.u32 %v949_v36, 16  ;;  %v389_v51 = vrot.slane %v387_v32, 5 }
  0x2d   : > { %v966_v45 = vrot.slane %v964_v38, 4  ;;  %v969_v46 = vrot.slane %v967_v39, 5  ;;  %v2614_v49 = vld [vmem:[#allocation2 + $0x10] sm:$0xf]  ;;  %v384_v50 = vor.u32 %v383_v42, %v380_v41  ;;  %v987_v52 = vshll.u32 %v2608_v37, 16  ;;  %s1902_s8 = sshll.u32 %s2968_s6, 4  ;;  %s2987_s8 = int_to_ptr.vmem [resolvable:$true] %s1902_s8 }
  0x2e   : > { %v2617_v53 = vld [vmem:[#allocation2 + $0x18] sm:$0xf]  ;;  %v2619_v54 = vld [vmem:[#allocation2 + $0x14] sm:$0x1]  ;;  %v975_v57 = vrot.slane %v973_v43, 5  ;;  %v980_v58 = vrot.slane %v978_v47, 4 }
  0x2f   : > { %v970_v56 = vor.u32 %v969_v46, %v966_v45  ;;  %v983_v59 = vrot.slane %v981_v48, 5  ;;  %v385_v60 = vrot.slane %v384_v50, 4  ;;  %v989_v61 = vrot.slane %v987_v52, 5  ;;  %v2626_v2 = vld [vmem:[#allocation2 + $0x1c] sm:$0x1]  ;;  %s2997_s16 = scalar_lea.sflag [#allocation4], %s161_s4 }
  0x30   : > { %v392_v62 = vshrl.u32 %v2614_v49, 16  ;;  %v395_v63 = vshll.u32 %v2614_v49, 16  ;;  %v401_v3 = vshll.u32 %v2619_v54, 16  ;;  %v406_v5 = vshrl.u32 %v2617_v53, 16  ;;  %v951_v13 = vld [vmem:[#allocation2 + $0x18] sm:$0xf] }
  0x31   : > { %v971_v0 = vrot.slane %v970_v56, 4  ;;  %v984_v1 = vor.u32 %v983_v59, %v980_v58  ;;  %v390_v6 = vsel %vm2580_vm10, %v385_v60, %v389_v51  ;;  %v409_v12 = vshll.u32 %v2617_v53, 16  ;;  %v2635_v24 = vld [vmem:[#allocation2 + $0x1c] sm:$0x1]  ;;  %v953_v38 = vld [vmem:[#allocation2 + $0x20] sm:$0xf] }
  0x32   : > { %v394_v8 = vrot.slane %v392_v62, 4  ;;  %v397_v10 = vrot.slane %v395_v63, 5  ;;  %v1971_v16 = vcombine.low %v376_v35, %v390_v6  ;;  %v403_v23 = vrot.slane %v401_v3, 5  ;;  %v2643_v41 = vld [vmem:[#allocation2 + $0x24] sm:$0x1]  ;;  %s2330_s17 = scalar_lea.vmem %s2987_s8, 512 }
  0x33   : > { %v976_v17 = vsel %vm2580_vm10, %v971_v0, %v975_v57  ;;  %v985_v20 = vrot.slane %v984_v1, 4  ;;  %v408_v31 = vrot.slane %v406_v5, 4  ;;  %v411_v32 = vrot.slane %v409_v12, 5  ;;  %v2646_v56 = vld [vmem:[#allocation2 + $0x20] sm:$0xf]  ;;  %p2331_p11 = scmp.ne.s32.totalorder %s2987_s8, %s2330_s17  ;;  %s2396_s19 = smov [#allocation3]  }
  0x34   : > { %v398_v30 = vor.u32 %v397_v10, %v394_v8  ;;  %v415_v36 = vshll.u32 %v2626_v2, 16  ;;  %2122 = vmatprep.mubr.msk.bf16.mxu1 %vm487_vm11, %v1971_v16  ;;  %v1201_v35 = vrot.slane %v2601_v33, 5  ;;  %v1205_v40 = vrot.slane %v2608_v37, 5  ;;  %v2655_v3 = vld [vmem:[#allocation2 + $0x24] sm:$0x1]  ;;  %s2334_s20 = sshll.u32 %s2396_s19, 4  ;;  %s2335_s20 = int_to_ptr.vmem [resolvable:$false] %s2334_s20 }
  0x35   : > { %v990_v39 = vsel %vm2580_vm10, %v985_v20, %v989_v61  ;;  %v992_v42 = vshrl.u32 %v951_v13, 16  ;;  %v412_v46 = vor.u32 %v411_v32, %v408_v31  ;;  %v995_v50 = vshll.u32 %v951_v13, 16  ;;  %v2652_v61 = vld [vmem:[#allocation2 + $0x28] sm:$0xf]  ;;  %v2660_v12 = vld [vmem:[#allocation2 + $0x2c] sm:$0x1]  ;;  %p2332_p12 = pnand %p2331_p11, %p2457_p5  ;;  %p2337_p0 = scmp.lt.s32.totalorder %s2987_s8, %s2335_s20 }
  0x36   : > { %v2011_v43 = vcombine.low %v976_v17, %v990_v39  ;;  %v399_v45 = vrot.slane %v398_v30, 4  ;;  %v417_v47 = vrot.slane %v415_v36, 5  ;;  %v1001_v51 = vshll.u32 %v2635_v24, 16  ;;  %s2336_s24 = scalar_lea.vmem %s2335_s20, 1024 }
  0x37   : > { %v994_v48 = vrot.slane %v992_v42, 4  ;;  %v1006_v52 = vshrl.u32 %v953_v38, 16  ;;  %v413_v58 = vrot.slane %v412_v46, 4  ;;  %v1009_v59 = vshll.u32 %v953_v38, 16  ;;  %v320_v38 = vld [vmem:[#allocation2 + $0x34] sm:$0x1]  ;;  %p2333_p13 = pneg %p2332_p12  ;;  %p2338_p1 = scmp.lt.s32.totalorder %s2336_s24, %s2330_s17 }
  0x38   : > { %2162 = vmatprep.mubr.msk.bf16.mxu0 %vm487_vm11, %v2011_v43  ;;  %v404_v57 = vsel %vm2580_vm10, %v399_v45, %v403_v23  ;;  %v1015_v60 = vshll.u32 %v2643_v41, 16  ;;  %v997_v62 = vrot.slane %v995_v50, 5  ;;  %v1003_v63 = vrot.slane %v1001_v51, 5  ;;  %v317_v23 = vld [vmem:[#allocation2 + $0x30] sm:$0xf] }
  0x39   : > { %v1008_v0 = vrot.slane %v1006_v52, 4  ;;  %v1209_v1 = vrot.slane %v2635_v24, 5  ;;  %v418_v5 = vsel %vm2580_vm10, %v413_v58, %v417_v47  ;;  %v1011_v6 = vrot.slane %v1009_v59, 5  ;;  %v1175_v46 = vld [vmem:[#allocation2 + $0x8] sm:$0xe]  ;;  %p2339_p2 = por %p2338_p1, %p2337_p0 }
  0x3a   : > { %v1017_v8 = vrot.slane %v1015_v60, 5  ;;  %v1213_v10 = vrot.slane %v2643_v41, 5  ;;  %v1972_v13 = vcombine.low %v404_v57, %v418_v5  ;;  %v998_v16 = vor.u32 %v997_v62, %v994_v48  ;;  %v1176_v52 = vld [vmem:[#allocation2 + $0x10] sm:$0xe]  ;;  %v342_v24 = vld [vmem:[%s3039_s1 + $0xe] sm:$0x3] }
  0x3b   : > { %v420_v17 = vshrl.u32 %v2646_v56, 16  ;;  %v423_v20 = vshll.u32 %v2646_v56, 16  ;;  %v1012_v30 = vor.u32 %v1011_v6, %v1008_v0  ;;  %v429_v31 = vshll.u32 %v2655_v3, 16  ;;  %v1178_v6 = vld [vmem:[#allocation2 + $0x20] sm:$0xe]  ;;  %p2340_p3 = pnand %p2339_p2, %p2333_p13 }
  0x3c   : > { %v434_v32 = vshrl.u32 %v2652_v61, 16  ;;  %v437_v36 = vshll.u32 %v2652_v61, 16  ;;  %2123 = vmatmul.mubr.msk.bf16.vlgmr.msra.gmra.mrb[0].mxu1 %vm487_vm11, %v1972_v13  ;;  %v999_v39 = vrot.slane %v998_v16, 4  ;;  %v443_v45 = vshll.u32 %v2660_v12, 16 }
  0x3d   : > { %v422_v42 = vrot.slane %v420_v17, 4  ;;  %v425_v43 = vrot.slane %v423_v20, 5  ;;  %2131 = vmatpush3.bf16.msra.mxu1 %v2508_v9  ;;  %v1013_v47 = vrot.slane %v1012_v30, 4  ;;  %v431_v48 = vrot.slane %v429_v31, 5  ;;  %v323_v17 = vld [vmem:[#allocation2 + $0x38] sm:$0xf] }
  0x3e   : > { %v436_v50 = vrot.slane %v434_v32, 4  ;;  %v439_v51 = vrot.slane %v437_v36, 5  ;;  %v1004_v57 = vsel %vm2580_vm10, %v999_v39, %v1003_v63  ;;  %v445_v59 = vrot.slane %v443_v45, 5  ;;  %2140 = vmatprep.subr.bf16.mxu1 %v2596_v27  ;;  %v199_v45 = vld [vmem:[%s2517_s9 + $0x1c] sm:$0xf] }
  0x3f   : > { %v426_v58 = vor.u32 %v425_v43, %v422_v42  ;;  %v247_v60 = vrot.slane %v2584_v18, 4  ;;  %v1018_v62 = vsel %vm2580_vm10, %v1013_v47, %v1017_v8  ;;  %v251_v9 = vrot.slane %v249_v34, 7  ;;  %v1177_v18 = vld [vmem:[#allocation2 + $0x18] sm:$0xe]  ;;  %v326_v34 = vld [vmem:[#allocation2 + $0x3c] sm:$0x1] }
  0x40   : > { %v440_v0 = vor.u32 %v439_v51, %v436_v50  ;;  %v318_v5 = vsel %vm2530_vm6, %v2622_v55, %v317_v23  ;;  %v2012_v13 = vcombine.low %v1004_v57, %v1018_v62  ;;  %v2019_v20 = vrot.slane %v1175_v46, 9  ;;  %v2709_v43 = vld [vmem:[#allocation2 + $0x2c] sm:$0x1] }
  0x41   : > { %v427_v16 = vrot.slane %v426_v58, 4  ;;  %319 = vst [vmem:[#allocation2 + $0x30] sm:$0xf] %v318_v5  ;;  %v321_v8 = vsel %vm2536_vm7, %v247_v60, %v320_v38  ;;  %v254_v55 = vor.u32 %v252_v44, %v251_v9  ;;  %v255_v23 = vrot.slane %v251_v9, 4 }
  0x42   : > { %v441_v30 = vrot.slane %v440_v0, 4  ;;  %322 = vst [vmem:[#allocation2 + $0x34] sm:$0x1] %v321_v8  ;;  %v2020_v31 = vrot.slane %v1176_v52, 9  ;;  %2163 = vmatmul.mubr.msk.bf16.vlgmr.msra.gmra.mrb[0].mxu0 %vm487_vm11, %v2012_v13  ;;  %v1202_v36 = vsel %vm2683_vm14, %v2019_v20, %v1201_v35  ;;  %v2021_v38 = vrot.slane %v1177_v18, 9 }
  0x43   : > { %v432_v32 = vsel %vm2580_vm10, %v427_v16, %v431_v48  ;;  %v2022_v39 = vrot.slane %v1178_v6, 9  ;;  %2171 = vmatpush3.bf16.msra.mxu0 %v2520_v11  ;;  %v324_v44 = vsel %vm2530_vm6, %v254_v55, %v323_v17  ;;  %v327_v42 = vsel %vm2536_vm7, %v255_v23, %v326_v34  ;;  %v1179_v35 = vld [vmem:[#allocation2 + $0x28] sm:$0xe]  ;;  %v332_v16 = vld [vmem:[#allocation2 + $0x44] sm:$0x1] }
  0x44   : > { %v446_v14 = vsel %vm2580_vm10, %v441_v30, %v445_v59  ;;  %v1206_v33 = vsel %vm2683_vm14, %v2020_v31, %v1205_v40  ;;  %325 = vst [vmem:[#allocation2 + $0x38] sm:$0xf] %v324_v44  ;;  %328 = vst [vmem:[#allocation2 + $0x3c] sm:$0x1] %v327_v42  ;;  %2180 = vmatprep.subr.bf16.mxu0 %v2593_v26  ;;  %v1210_v47 = vsel %vm2683_vm14, %v2021_v38, %v1209_v1  ;;  %vm1879_vm1 = vcmask 125952  }
  0x45   : > { %v1973_v46 = vcombine.low %v432_v32, %v446_v14  ;;  %v2027_v11 = vcombine.low %v1202_v36, %v1206_v33  ;;  %v1214_v37 = vsel %vm2683_vm14, %v2022_v39, %v1213_v10  ;;  %v2023_v40 = vrot.slane %v1179_v35, 9  ;;  %v329_v10 = vld [vmem:[#allocation2 + $0x40] sm:$0xf] }
  0x46   : > { %v1217_v48 = vrot.slane %v2709_v43, 5  ;;  %v257_v50 = vshrl.u32 %v199_v45, 16  ;;  %v260_v52 = vshll.u32 %v199_v45, 16  ;;  %v2028_v60 = vcombine.low %v1210_v47, %v1214_v37  ;;  %v672_v37 = vld [vmem:[#allocation2] sm:$0xe] }
  0x47   : > { %2126 = vmatprep.mubr.msk.bf16.mxu1 %vm487_vm11, %v1973_v46  ;;  %2172 = vmatprep.mubr.msk.bf16.mxu0 %vm487_vm11, %v2027_v11  ;;  %v2746_v55 = vand.u32 %v2474_v4, %v342_v24  ;;  %v701_v45 = vrot.slane %v2542_v29, 5  ;;  %v705_v25 = vrot.slane %v2588_v22, 5 }
  0x48   : > { %v2727_v51 = vld [vmem:[#allocation2 + $0x30] sm:$0xf]  ;;  %v259_v9 = vrot.slane %v257_v50, 7  ;;  %v1218_v13 = vsel %vm2683_vm14, %v2023_v40, %v1217_v48  ;;  %v673_v40 = vld [vmem:[#allocation2 + $0x8] sm:$0xe] }
  0x49   : > { %v1180_v1 = vld [vmem:[#allocation2 + $0x30] sm:$0xe]  ;;  %v2729_v57 = vld [vmem:[#allocation2 + $0x34] sm:$0x1]  ;;  %v448_v58 = vshrl.u32 %v2727_v51, 16  ;;  %v451_v41 = vshll.u32 %v2727_v51, 16 }
  0x4a   : > { %v2733_v59 = vld [vmem:[#allocation2 + $0x34] sm:$0x1]  ;;  %v2024_v62 = vrot.slane %v1180_v1, 9  ;;  %v457_v6 = vshll.u32 %v2729_v57, 16  ;;  %v262_v20 = vor.u32 %v260_v52, %v259_v9  ;;  %v263_v30 = vrot.slane %v259_v9, 4 }
  0x4b   : > { %v1221_v0 = vrot.slane %v2733_v59, 5  ;;  %v450_v5 = vrot.slane %v448_v58, 4  ;;  %v453_v18 = vrot.slane %v451_v41, 5  ;;  %v2739_v8 = vld [vmem:[#allocation2 + $0x38] sm:$0xf]  ;;  %v709_v52 = vrot.slane %v2619_v54, 5 }
  0x4c   : > { %v2741_v17 = vld [vmem:[#allocation2 + $0x3c] sm:$0x1]  ;;  %v462_v31 = vshrl.u32 %v2739_v8, 16  ;;  %v465_v32 = vshll.u32 %v2739_v8, 16  ;;  %v330_v39 = vsel %vm2530_vm6, %v262_v20, %v329_v10  ;;  %v333_v14 = vsel %vm2536_vm7, %v263_v30, %v332_v16  ;;  %v1181_v19 = vld [vmem:[#allocation2 + $0x38] sm:$0xe] }
  0x4d   : > { %v1222_v34 = vsel %vm2683_vm14, %v2024_v62, %v1221_v0  ;;  %v454_v23 = vor.u32 %v453_v18, %v450_v5  ;;  %v471_v36 = vshll.u32 %v2741_v17, 16  ;;  %v459_v42 = vrot.slane %v457_v6, 5  ;;  %331 = vst [vmem:[#allocation2 + $0x40] sm:$0xf] %v330_v39  ;;  %334 = vst [vmem:[#allocation2 + $0x44] sm:$0x1] %v333_v14 }
  0x4e   : > { %v2029_v38 = vcombine.low %v1218_v13, %v1222_v34  ;;  %v464_v33 = vrot.slane %v462_v31, 4  ;;  %v467_v35 = vrot.slane %v465_v32, 5  ;;  %2173 = vmatmul.mubr.msk.bf16.vlgmr.msra.gmra.mrb[0].mxu0 %vm487_vm11, %v2028_v60  ;;  %v2759_v46 = vld [vmem:[#allocation2 + $0x3c] sm:$0x1]  ;;  %v338_v48 = vld [vmem:[%s3039_s1 + $0x6] sm:$0x3]  ;;  %v1979_v0 = vcombine.low %v2540_v28, %v2586_v21 }
  0x4f   : > { %v455_v44 = vrot.slane %v454_v23, 4  ;;  %2181 = vmatpush3.bf16.msra.mxu0 %v2593_v26  ;;  %v473_v47 = vrot.slane %v471_v36, 5  ;;  %v2025_v50 = vrot.slane %v1181_v19, 9  ;;  %v1225_v24 = vrot.slane %v2759_v46, 5  ;;  %v343_v1 = vld [vmem:[%s3039_s1 + $0x10] sm:$0x3] }
  0x50   : > { %2176 = vmatprep.mubr.msk.bf16.mxu0 %vm487_vm11, %v2029_v38  ;;  %v468_v11 = vor.u32 %v467_v35, %v464_v33  ;;  %2190 = vmatprep.subr.bf16.mxu0 %v2746_v55  ;;  %v1987_v58 = vrot.slane %v672_v37, 9  ;;  %v2773_v41 = vld [vmem:[#allocation2 + $0x10] sm:$0xe]  ;;  %v2775_v10 = vld [vmem:[#allocation2 + $0x18] sm:$0xe]  ;;  %v713_v60 = vrot.slane %v2626_v2, 5  ;;  %v1980_v13 = vcombine.low %v2614_v49, %v2617_v53 }
  0x51   : > { %v460_v29 = vsel %vm2580_vm10, %v455_v44, %v459_v42  ;;  %v1988_v9 = vrot.slane %v673_v40, 9  ;;  %v1448_v5 = vld [vmem:[#allocation2 + $0x10] sm:$0xf]  ;;  %v1450_v18 = vld [vmem:[#allocation2 + $0x18] sm:$0xf]  ;;  %v1981_v20 = vcombine.low %v2646_v56, %v2652_v61  ;;  %v2789_v30 = vand.u32 %v2474_v4, %v338_v48 }
  0x52   : > { %v469_v26 = vrot.slane %v468_v11, 4  ;;  %v1226_v23 = vsel %vm2683_vm14, %v2025_v50, %v1225_v24  ;;  %v2322_v31 = vld [vmem:[#allocation2 + $0x10] ss:$8 sps:$4 sm:$0xff]   ;;  %v2794_v32 = vld [vmem:[#allocation2 + $0x20] sm:$0xe]  ;;  %v2799_v49 = vand.u32 %v2474_v4, %v343_v1  ;;  %v2804_v53 = vsel %vm2683_vm14, %v1987_v58, %v701_v45 }
  0x53   : > { %v2796_v36 = vld [vmem:[#allocation2 + $0x14] sm:$0x1]  ;;  %v2806_v56 = vld [vmem:[#allocation2 + $0x1c] sm:$0x1]  ;;  %v1465_v61 = vshrl.u32 %v1448_v5, 16  ;;  %v1468_v38 = vshll.u32 %v1448_v5, 16 }
  0x54   : > { %v474_v62 = vsel %vm2580_vm10, %v469_v26, %v473_v47  ;;  %v2784_v16 = vld [vmem:[#allocation2 + $0x44] sm:$0x1]  ;;  %v1182_v34 = vld [vmem:[#allocation2 + $0x40] sm:$0xe]  ;;  %v1479_v39 = vshrl.u32 %v1450_v18, 16  ;;  %v1989_v44 = vrot.slane %v2773_v41, 9  ;;  %v2823_v41 = vsel %vm2683_vm14, %v1988_v9, %v705_v25 }
  0x55   : > { %v1974_v6 = vcombine.low %v460_v29, %v474_v62  ;;  %v2026_v28 = vrot.slane %v1182_v34, 9  ;;  %v1229_v21 = vrot.slane %v2784_v16, 5  ;;  %v1990_v4 = vrot.slane %v2775_v10, 9  ;;  %v1452_v33 = vld [vmem:[#allocation2 + $0x20] sm:$0xf] }
  0x56   : > { %v1482_v42 = vshll.u32 %v1450_v18, 16  ;;  %v1467_v19 = vrot.slane %v1465_v61, 4  ;;  %v1470_v45 = vrot.slane %v1468_v38, 5  ;;  %v1474_v11 = vshll.u32 %v2796_v36, 16  ;;  %v1454_v47 = vld [vmem:[#allocation2 + $0x28] sm:$0xf] }
  0x57   : > { %2127 = vmatmul.mubr.msk.bf16.gmra.mrb[4].mxu1 %vm487_vm11, %v1974_v6  ;;  %v1230_v14 = vsel %vm2683_vm14, %v2026_v28, %v1229_v21  ;;  %v1991_v37 = vrot.slane %v2794_v32, 9  ;;  %v1481_v40 = vrot.slane %v1479_v39, 4  ;;  %v1488_v29 = vshll.u32 %v2806_v56, 16  ;;  %v677_v26 = vld [vmem:[#allocation2 + $0x28] sm:$0xe] }
  0x58   : > { %2132 = vmatprep.mubr.msk.bf16.mxu1 %vm487_vm11, %v1979_v0  ;;  %v2030_v35 = vcombine.low %v1226_v23, %v1230_v14  ;;  %v1484_v48 = vrot.slane %v1482_v42, 5  ;;  %v717_v50 = vrot.slane %v2655_v3, 5  ;;  %v1471_v24 = vor.u32 %v1470_v45, %v1467_v19  ;;  %v2825_v62 = vld [vmem:[#allocation2 + $0x24] sm:$0x1]  ;;  %v1456_v18 = vld [vmem:[#allocation2 + $0x30] sm:$0xf] }
  0x59   : > { %v1493_v1 = vshrl.u32 %v1452_v33, 16  ;;  %v1496_v58 = vshll.u32 %v1452_v33, 16  ;;  %v1507_v0 = vshrl.u32 %v1454_v47, 16  ;;  %v1510_v5 = vshll.u32 %v1454_v47, 16  ;;  %v2323_v6 = vld [vmem:[#allocation2 + $0x20] ss:$8 sps:$4 sm:$0xff]  }
  0x5a   : > { %2177 = vmatmul.mubr.msk.bf16.gmra.mrb[4].mxu0 %vm487_vm11, %v2030_v35  ;;  %v1485_v10 = vor.u32 %v1484_v48, %v1481_v40  ;;  %v1472_v34 = vrot.slane %v1471_v24, 4  ;;  %v1476_v3 = vrot.slane %v1474_v11, 5  ;;  %v1490_v23 = vrot.slane %v1488_v29, 5  ;;  %v2827_v28 = vld [vmem:[#allocation2 + $0x2c] sm:$0x1] }
  0x5b   : > { %2182 = vmatprep.mubr.msk.bf16.mxu0 %vm487_vm11, %v2322_v31  ;;  %v1495_v21 = vrot.slane %v1493_v1, 4  ;;  %v1498_v32 = vrot.slane %v1496_v58, 5  ;;  %v1509_v22 = vrot.slane %v1507_v0, 4  ;;  %v1512_v61 = vrot.slane %v1510_v5, 5  ;;  %v1458_v38 = vld [vmem:[#allocation2 + $0x38] sm:$0xf] }
  0x5c   : > { %v1486_v31 = vrot.slane %v1485_v10, 4  ;;  %v1982_v25 = vcombine.low %v2727_v51, %v2739_v8  ;;  %v1995_v9 = vcombine.low %v2804_v53, %v2823_v41  ;;  %v1521_v39 = vshrl.u32 %v1456_v18, 16  ;;  %v2324_v8 = vld [vmem:[#allocation2 + $0x30] ss:$8 sps:$4 sm:$0xff]   ;;  %v1462_v40 = vld [vmem:[#allocation2 + $0x48] sm:$0xf] }
  0x5d   : > { %v1524_v14 = vshll.u32 %v1456_v18, 16  ;;  %v2840_v42 = vsel %vm2683_vm14, %v1989_v44, %v709_v52  ;;  %v2846_v51 = vsel %vm2683_vm14, %v1990_v4, %v713_v60  ;;  %v721_v53 = vrot.slane %v2660_v12, 5  ;;  %v2849_v33 = vld [vmem:[#allocation2 + $0x30] sm:$0xe]  ;;  %v1460_v60 = vld [vmem:[#allocation2 + $0x40] sm:$0xf] }
  0x5e   : > { %v2856_v54 = vsel %vm2683_vm14, %v1991_v37, %v717_v50  ;;  %v1502_v2 = vshll.u32 %v2825_v62, 16  ;;  %v1523_v52 = vrot.slane %v1521_v39, 4  ;;  %v1477_v44 = vsel %vm2580_vm10, %v1472_v34, %v1476_v3  ;;  %v2862_v4 = vld [vmem:[#allocation2 + $0x3c] sm:$0x1]  ;;  %v679_v1 = vld [vmem:[#allocation2 + $0x38] sm:$0xe] }
  0x5f   : > { %2133 = vmatmul.mubr.msk.bf16.vlgmr.msra.gmra.mrb[0].mxu1 %vm487_vm11, %v1980_v13  ;;  %v1992_v13 = vrot.slane %v677_v26, 9  ;;  %v1516_v12 = vshll.u32 %v2827_v28, 16  ;;  %v1535_v35 = vshrl.u32 %v1458_v38, 16  ;;  %v1538_v19 = vshll.u32 %v1458_v38, 16  ;;  %v2325_v0 = vld [vmem:[#allocation2 + $0x40] ss:$8 sps:$4 sm:$0xff]  }
  0x60   : > { %2141 = vmatpush3.bf16.msra.mxu1 %v2596_v27  ;;  %2136 = vmatprep.mubr.msk.bf16.mxu1 %vm487_vm11, %v1981_v20  ;;  %v2851_v27 = vld [vmem:[#allocation2 + $0x34] sm:$0x1]  ;;  %v1526_v20 = vrot.slane %v1524_v14, 5  ;;  %v1491_v45 = vsel %vm2580_vm10, %v1486_v31, %v1490_v23  ;;  %v1499_v11 = vor.u32 %v1498_v32, %v1495_v21  ;;  %v1513_v47 = vor.u32 %v1512_v61, %v1509_v22  ;;  %v2876_v21 = vld [vmem:[#allocation2 + $0x44] sm:$0x1] }
  0x61   : > { %2150 = vmatprep.subr.bf16.mxu1 %v2789_v30  ;;  %v1530_v37 = vshll.u32 %v2851_v27, 16  ;;  %v1537_v48 = vrot.slane %v1535_v35, 4  ;;  %v1540_v29 = vrot.slane %v1538_v19, 5  ;;  %v1549_v26 = vshrl.u32 %v1460_v60, 16  ;;  %v2879_v22 = vld [vmem:[#allocation2 + $0x4c] sm:$0x1] }
  0x62   : > { %2183 = vmatmul.mubr.msk.bf16.vlgmr.msra.gmra.mrb[0].mxu0 %vm487_vm11, %v2323_v6  ;;  %v1552_v50 = vshll.u32 %v1460_v60, 16  ;;  %v722_v24 = vsel %vm2683_vm14, %v1992_v13, %v721_v53  ;;  %v1993_v58 = vrot.slane %v2849_v33, 9  ;;  %v1527_v41 = vor.u32 %v1526_v20, %v1523_v52 }
  0x63   : > { %2191 = vmatpush3.bf16.msra.mxu0 %v2746_v55  ;;  %2186 = vmatprep.mubr.msk.bf16.mxu0 %vm487_vm11, %v2324_v8  ;;  %v1544_v10 = vshll.u32 %v2862_v4, 16  ;;  %v1504_v5 = vrot.slane %v1502_v2, 5  ;;  %v1518_v55 = vrot.slane %v1516_v12, 5  ;;  %v1541_v18 = vor.u32 %v1540_v29, %v1537_v48  ;;  %v1676_v12 = vld [vmem:[#allocation2 + $0x10] sm:$0xe] }
  0x64   : > { %2200 = vmatprep.subr.bf16.mxu0 %v2799_v49  ;;  %v1563_v6 = vshrl.u32 %v1462_v40, 16  ;;  %v2043_v34 = vcombine.low %v1477_v44, %v1491_v45  ;;  %v1500_v3 = vrot.slane %v1499_v11, 4  ;;  %v1514_v23 = vrot.slane %v1513_v47, 4 }
  0x65   : > { %v1566_v31 = vshll.u32 %v1462_v40, 16  ;;  %v1532_v32 = vrot.slane %v1530_v37, 5  ;;  %v1551_v61 = vrot.slane %v1549_v26, 4  ;;  %v1554_v38 = vrot.slane %v1552_v50, 5  ;;  %v957_v40 = vld [vmem:[#allocation2 + $0x30] sm:$0xf] }
  0x66   : > { %v1565_v39 = vrot.slane %v1563_v6, 4  ;;  %v1528_v14 = vrot.slane %v1527_v41, 4  ;;  %v1542_v8 = vrot.slane %v1541_v18, 4  ;;  %v1546_v13 = vrot.slane %v1544_v10, 5  ;;  %v2326_v6 = vld [vmem:[#allocation2 + $0x8] ss:$8 sps:$4 sm:$0xff]  }
  0x67   : > { %2137 = vmatmul.mubr.msk.bf16.gmra.mrb[4].mxu1 %vm487_vm11, %v1982_v25  ;;  %v1568_v53 = vrot.slane %v1566_v31, 5  ;;  %v1996_v25 = vcombine.low %v2840_v42, %v2846_v51  ;;  %v725_v33 = vrot.slane %v2729_v57, 5  ;;  %v1994_v2 = vrot.slane %v679_v1, 9  ;;  %v1680_v31 = vld [vmem:[#allocation2 + $0x30] sm:$0xe] }
  0x68   : > { %2142 = vmatprep.mubr.msk.bf16.mxu1 %vm487_vm11, %v1995_v9  ;;  %v729_v52 = vrot.slane %v2741_v17, 5  ;;  %v1505_v9 = vsel %vm2580_vm10, %v1500_v3, %v1504_v5  ;;  %v1519_v20 = vsel %vm2580_vm10, %v1514_v23, %v1518_v55  ;;  %v1558_v60 = vshll.u32 %v2876_v21, 16  ;;  %v1677_v17 = vld [vmem:[#allocation2 + $0x18] sm:$0xe]  ;;  %v1679_v23 = vld [vmem:[#allocation2 + $0x28] sm:$0xe] }
  0x69   : > { %v1572_v44 = vshll.u32 %v2879_v22, 16  ;;  %v1997_v42 = vcombine.low %v2856_v54, %v722_v24  ;;  %v1555_v57 = vor.u32 %v1554_v38, %v1551_v61  ;;  %v1569_v51 = vor.u32 %v1568_v53, %v1565_v39  ;;  %v955_v54 = vld [vmem:[#allocation2 + $0x28] sm:$0xf] }
  0x6a   : > { %2187 = vmatmul.mubr.msk.bf16.gmra.mrb[4].mxu0 %vm487_vm11, %v2325_v0  ;;  %v1533_v35 = vsel %vm2580_vm10, %v1528_v14, %v1532_v32  ;;  %v1547_v19 = vsel %vm2580_vm10, %v1542_v8, %v1546_v13  ;;  %v726_v45 = vsel %vm2683_vm14, %v1993_v58, %v725_v33  ;;  %v730_v11 = vsel %vm2683_vm14, %v1994_v2, %v729_v52  ;;  %v1681_v14 = vld [vmem:[#allocation2 + $0x38] sm:$0xe] }
  0x6b   : > { %2192 = vmatprep.mubr.msk.bf16.mxu0 %vm487_vm11, %v2043_v34  ;;  %v2044_v47 = vcombine.low %v1505_v9, %v1519_v20  ;;  %v2051_v37 = vrot.slane %v1676_v12, 9  ;;  %v1560_v48 = vrot.slane %v1558_v60, 5  ;;  %v1574_v29 = vrot.slane %v1572_v44, 5  ;;  %v959_v2 = vld [vmem:[#allocation2 + $0x38] sm:$0xf] }
  0x6c   : > { %v1702_v26 = vrot.slane %v2796_v36, 5  ;;  %v2052_v50 = vrot.slane %v1677_v17, 9  ;;  %v2045_v24 = vcombine.low %v1533_v35, %v1547_v19  ;;  %v1556_v1 = vrot.slane %v1555_v57, 4  ;;  %v961_v44 = vld [vmem:[#allocation2 + $0x40] sm:$0xf] }
  0x6d   : > { %v1570_v58 = vrot.slane %v1569_v51, 4  ;;  %v1706_v41 = vrot.slane %v2806_v56, 5  ;;  %v1020_v10 = vshrl.u32 %v955_v54, 16  ;;  %v1023_v0 = vshll.u32 %v955_v54, 16  ;;  %v2327_v17 = vld [vmem:[#allocation2 + $0x18] ss:$8 sps:$4 sm:$0xff]  }
  0x6e   : > { %v1034_v5 = vshrl.u32 %v957_v40, 16  ;;  %v1037_v55 = vshll.u32 %v957_v40, 16  ;;  %v1998_v18 = vcombine.low %v726_v45, %v730_v11  ;;  %v1703_v36 = vsel %vm2683_vm14, %v2051_v37, %v1702_v26  ;;  %v1682_v11 = vld [vmem:[#allocation2 + $0x40] sm:$0xe] }
  0x6f   : > { %2143 = vmatmul.mubr.msk.bf16.vlgmr.msra.gmra.mrb[0].mxu1 %vm487_vm11, %v1996_v25  ;;  %v1561_v56 = vsel %vm2580_vm10, %v1556_v1, %v1560_v48  ;;  %v1575_v34 = vsel %vm2580_vm10, %v1570_v58, %v1574_v29  ;;  %v1707_v3 = vsel %vm2683_vm14, %v2052_v50, %v1706_v41  ;;  %v1022_v32 = vrot.slane %v1020_v10, 4  ;;  %v1683_v48 = vld [vmem:[#allocation2 + $0x48] sm:$0xe] }
  0x70   : > { %2151 = vmatpush3.bf16.msra.mxu1 %v2789_v30  ;;  %2146 = vmatprep.mubr.msk.bf16.mxu1 %vm487_vm11, %v1997_v42  ;;  %v1678_v30 = vld [vmem:[#allocation2 + $0x20] sm:$0xe]  ;;  %v1025_v61 = vrot.slane %v1023_v0, 5  ;;  %v1036_v38 = vrot.slane %v1034_v5, 4  ;;  %v1039_v39 = vrot.slane %v1037_v55, 5  ;;  %v1710_v8 = vrot.slane %v2825_v62, 5 }
  0x71   : > { %2210 = vmatprep.subr.bf16.mxu1 %v2501_v7  ;;  %v2046_v13 = vcombine.low %v1561_v56, %v1575_v34  ;;  %v2059_v53 = vcombine.low %v1703_v36, %v1707_v3  ;;  %v2054_v25 = vrot.slane %v1679_v23, 9  ;;  %v1714_v33 = vrot.slane %v2827_v28, 5 }
  0x72   : > { %2193 = vmatmul.mubr.msk.bf16.vlgmr.msra.gmra.mrb[0].mxu0 %vm487_vm11, %v2044_v47  ;;  %v2055_v52 = vrot.slane %v1680_v31, 9  ;;  %v1718_v9 = vrot.slane %v2851_v27, 5  ;;  %v2056_v20 = vrot.slane %v1681_v14, 9  ;;  %v1722_v60 = vrot.slane %v2862_v4, 5  ;;  %v2328_v4 = vld [vmem:[#allocation2 + $0x28] ss:$8 sps:$4 sm:$0xff]  }
  0x73   : > { %2201 = vmatpush3.bf16.msra.mxu0 %v2799_v49  ;;  %2196 = vmatprep.mubr.msk.bf16.mxu0 %vm487_vm11, %v2045_v24  ;;  %v2053_v49 = vrot.slane %v1678_v30, 9  ;;  %v1026_v12 = vor.u32 %v1025_v61, %v1022_v32  ;;  %v1029_v62 = vshll.u32 %v2709_v43, 16  ;;  %v1040_v42 = vor.u32 %v1039_v39, %v1036_v38 }
  0x74   : > { %v1043_v57 = vshll.u32 %v2733_v59, 16  ;;  %v1048_v51 = vshrl.u32 %v959_v2, 16  ;;  %v1715_v27 = vsel %vm2683_vm14, %v2054_v25, %v1714_v33  ;;  %v1051_v35 = vshll.u32 %v959_v2, 16 }
  0x75   : > { %v1711_v28 = vsel %vm2683_vm14, %v2053_v49, %v1710_v8  ;;  %v1062_v19 = vshrl.u32 %v961_v44, 16  ;;  %v1719_v43 = vsel %vm2683_vm14, %v2055_v52, %v1718_v9  ;;  %v1723_v59 = vsel %vm2683_vm14, %v2056_v20, %v1722_v60 }
  0x76   : > { %v1065_v45 = vshll.u32 %v961_v44, 16  ;;  %v1027_v47 = vrot.slane %v1026_v12, 4  ;;  %v1031_v37 = vrot.slane %v1029_v62, 5  ;;  %v1041_v54 = vrot.slane %v1040_v42, 4 }
  0x77   : > { %2147 = vmatmul.mubr.msk.bf16.gmra.mrb[4].mxu1 %vm487_vm11, %v1998_v18  ;;  %v1045_v40 = vrot.slane %v1043_v57, 5  ;;  %v2060_v29 = vcombine.low %v1711_v28, %v1715_v27  ;;  %v1050_v26 = vrot.slane %v1048_v51, 4  ;;  %v2061_v50 = vcombine.low %v1719_v43, %v1723_v59 }
  0x78   : > { %2152 = vmatprep.mubr.msk.bf16.mxu1 %vm487_vm11, %v2326_v6  ;;  %v1053_v24 = vrot.slane %v1051_v35, 5  ;;  %v1064_v1 = vrot.slane %v1062_v19, 4  ;;  %v2057_v58 = vrot.slane %v1682_v11, 9  ;;  %v1067_v41 = vrot.slane %v1065_v45, 5  ;;  %v2329_v6 = vld [vmem:[#allocation2 + $0x38] ss:$8 sps:$4 sm:$0xff]  }
  0x79   : > { %v1726_v10 = vrot.slane %v2876_v21, 5  ;;  %v2058_v0 = vrot.slane %v1683_v48, 9  ;;  %v1730_v5 = vrot.slane %v2879_v22, 5  ;;  %v1032_v55 = vsel %vm2580_vm10, %v1027_v47, %v1031_v37 }
  0x7a   : > { %2197 = vmatmul.mubr.msk.bf16.gmra.mrb[4].mxu0 %vm487_vm11, %v2046_v13  ;;  %v1046_v18 = vsel %vm2580_vm10, %v1041_v54, %v1045_v40  ;;  %v1057_v36 = vshll.u32 %v2759_v46, 16  ;;  %v1071_v30 = vshll.u32 %v2784_v16, 16  ;;  %v1068_v21 = vor.u32 %v1067_v41, %v1064_v1  ;;  %v2067_v13 = vld [vmem:[%s3040_s2] ss:$0 sm:$0xff] }
  0x7b   : > { %2202 = vmatprep.mubr.msk.bf16.mxu0 %vm487_vm11, %v2059_v53  ;;  %v2013_v56 = vcombine.low %v1032_v55, %v1046_v18  ;;  %v1727_v22 = vsel %vm2683_vm14, %v2057_v58, %v1726_v10  ;;  %v1731_v34 = vsel %vm2683_vm14, %v2058_v0, %v1730_v5 }
  0x7c   : > { %v2062_v3 = vcombine.low %v1727_v22, %v1731_v34  ;;  %v1059_v46 = vrot.slane %v1057_v36, 5  ;;  %v1073_v16 = vrot.slane %v1071_v30, 5  ;;  %v1069_v31 = vrot.slane %v1068_v21, 4 }
  0x7e   : > { %v1074_v61 = vsel %vm2580_vm10, %v1069_v31, %v1073_v16 }
  0x7f   : > { %2153 = vmatmul.mubr.msk.bf16.vlgmr.msra.gmra.mrb[0].mxu1 %vm487_vm11, %v2327_v17 }
  0x80   : > { %2211 = vmatpush3.bf16.msra.mxu1 %v2501_v7  ;;  %2156 = vmatprep.mubr.msk.bf16.mxu1 %vm487_vm11, %v2328_v4  ;;  %v1054_v7 = vor.u32 %v1053_v24, %v1050_v26 }
  0x82   : > { %2203 = vmatmul.mubr.msk.bf16.vlgmr.msra.gmra.mrb[0].mxu0 %vm487_vm11, %v2060_v29  ;;  %v1055_v23 = vrot.slane %v1054_v7, 4 }
  0x83   : > { %2206 = vmatprep.mubr.msk.bf16.mxu0 %vm487_vm11, %v2061_v50 }
  0x84   : > { %v1060_v32 = vsel %vm2580_vm10, %v1055_v23, %v1059_v46 }
  0x85   : > { %v2014_v63 = vcombine.low %v1060_v32, %v1074_v61 }
  0x87   : > { %2157 = vmatmul.mubr.msk.bf16.gmra.mrb[4].mxu1 %vm487_vm11, %v2329_v6 }
  0x88   : > { %2166 = vmatprep.mubr.msk.bf16.mxu1 %vm487_vm11, %v2013_v56 }
  0x8a   : > { %2207 = vmatmul.mubr.msk.bf16.gmra.mrb[4].mxu0 %vm487_vm11, %v2062_v3 }
  0x93   : > { %2167 = vmatmul.mubr.msk.bf16.vlgmr.msra.gmra.mrb[4].mxu1 %vm487_vm11, %v2014_v63 }
 0x152   : > { %v2154_v38 = vpop.f32.mrb[0].mxu1 }
 0x153   : > { %v908_v39 = vpop.f32.mrb[1].mxu1 }
 0x154   : > { %v2155_v14 = vpop.f32.mrb[2].mxu1 }
 0x155   : > { %v911_v49 = vpop.f32.mrb[3].mxu1  ;;  %v2204_v8 = vpop.f32.mrb[0].mxu0 }
 0x156   : > { %v2212_v53 = vadd.f32 %v2204_v8, %v2154_v38  ;;  %v1793_v25 = vpop.f32.mrb[1].mxu0 }
 0x157   : > { %v2213_v33 = vadd.f32 %v1793_v25, %v908_v39  ;;  %v2205_v2 = vpop.f32.mrb[2].mxu0 }
 0x158   : > { %v1841_v15 = vadd.f32 %v2212_v53, %v2067_v13  ;;  %v2214_v52 = vadd.f32 %v2205_v2, %v2155_v14  ;;  %v1796_v9 = vpop.f32.mrb[3].mxu0 }
 0x159   : > { %v1839_v20 = vadd.f32 %v2213_v33, %v2067_v13  ;;  %v2215_v60 = vadd.f32 %v1796_v9, %v911_v49 }
 0x15a   : > { %vm1849_vm15 = vcmp.ge.f32.partialorder %v1841_v15, 0.0  ;;  %v1857_v44 = vmul.f32 0.01, %v1841_v15  ;;  %v1842_v12 = vadd.f32 %v2214_v52, %v2067_v13 }
 0x15b   : > { %vm1847_vm0 = vcmp.ge.f32.partialorder %v1839_v20, 0.0  ;;  %v1855_v62 = vmul.f32 0.01, %v1839_v20  ;;  %v1840_v42 = vadd.f32 %v2215_v60, %v2067_v13 }
 0x15c   : > { %v1865_v57 = vsel %vm1849_vm15, %v1841_v15, %v1857_v44  ;;  %vm1850_vm2 = vcmp.ge.f32.partialorder %v1842_v12, 0.0  ;;  %v1858_v51 = vmul.f32 0.01, %v1842_v12 }
 0x15d   : > { %v1873_v17 = vpack.c.bf16 %v1865_v57, %v1865_v57  ;;  %v1863_v28 = vsel %vm1847_vm0, %v1839_v20, %v1855_v62  ;;  %vm1848_vm3 = vcmp.ge.f32.partialorder %v1840_v42, 0.0  ;;  %v1856_v27 = vmul.f32 0.01, %v1840_v42  ;;  %v2208_v35 = vpop.f32.mrb[4].mxu0 }
 0x15e   : > { %v1871_v19 = vpack.c.bf16 %v1863_v28, %v1863_v28  ;;  %v1866_v4 = vsel %vm1850_vm2, %v1842_v12, %v1858_v51  ;;  %v1809_v43 = vpop.f32.mrb[5].mxu0 }
 0x15f   : > { %1882 = vst.msk [vmem:[%s2968_s6 + $0x8] sm:$0xf] %vm1879_vm1, %v1873_v17  ;;  %v1874_v59 = vpack.c.bf16 %v1866_v4, %v1866_v4  ;;  %v1864_v45 = vsel %vm1848_vm3, %v1840_v42, %v1856_v27  ;;  %v2209_v11 = vpop.f32.mrb[6].mxu0 }
 0x160   : > { %1880 = vst.msk [vmem:[%s2968_s6] sm:$0xf] %vm1879_vm1, %v1871_v19  ;;  %v1872_v47 = vpack.c.bf16 %v1864_v45, %v1864_v45  ;;  %v1812_v37 = vpop.f32.mrb[7].mxu0 }
 0x161   : > { %1883 = vst.msk [vmem:[%s2968_s6 + $0xc] sm:$0xf] %vm1879_vm1, %v1874_v59 }
 0x162   : > { %1881 = vst.msk [vmem:[%s2968_s6 + $0x4] sm:$0xf] %vm1879_vm1, %v1872_v47 }
 0x166   : > { %v2168_v54 = vpop.f32.mrb[4].mxu1 }
 0x167   : > { %v2216_v40 = vadd.f32 %v2208_v35, %v2168_v54  ;;  %v1152_v48 = vpop.f32.mrb[5].mxu1 }
 0x168   : > { %v2217_v29 = vadd.f32 %v1809_v43, %v1152_v48  ;;  %v2169_v26 = vpop.f32.mrb[6].mxu1 }
 0x169   : > { %v1845_v50 = vadd.f32 %v2216_v40, %v2067_v13  ;;  %v2218_v24 = vadd.f32 %v2209_v11, %v2169_v26  ;;  %v1155_v1 = vpop.f32.mrb[7].mxu1 }
 0x16a   : > { %v1843_v58 = vadd.f32 %v2217_v29, %v2067_v13  ;;  %v2219_v41 = vadd.f32 %v1812_v37, %v1155_v1 }
 0x16b   : > { %vm1853_vm4 = vcmp.ge.f32.partialorder %v1845_v50, 0.0  ;;  %v1861_v10 = vmul.f32 0.01, %v1845_v50  ;;  %v1846_v0 = vadd.f32 %v2218_v24, %v2067_v13 }
 0x16c   : > { %vm1851_vm5 = vcmp.ge.f32.partialorder %v1843_v58, 0.0  ;;  %v1859_v5 = vmul.f32 0.01, %v1843_v58  ;;  %v1844_v55 = vadd.f32 %v2219_v41, %v2067_v13 }
 0x16d   : > { %v1869_v18 = vsel %vm1853_vm4, %v1845_v50, %v1861_v10  ;;  %vm1854_vm6 = vcmp.ge.f32.partialorder %v1846_v0, 0.0  ;;  %v1862_v36 = vmul.f32 0.01, %v1846_v0 }
 0x16e   : > { %v1877_v30 = vpack.c.bf16 %v1869_v18, %v1869_v18  ;;  %v1867_v6 = vsel %vm1851_vm5, %v1843_v58, %v1859_v5  ;;  %vm1852_vm7 = vcmp.ge.f32.partialorder %v1844_v55, 0.0  ;;  %v1860_v7 = vmul.f32 0.01, %v1844_v55 }
 0x16f   : > { %v1875_v56 = vpack.c.bf16 %v1867_v6, %v1867_v6  ;;  %v1870_v21 = vsel %vm1854_vm6, %v1846_v0, %v1862_v36 }
 0x170   : > { %1886 = vst.msk [vmem:[%s2968_s6 + $0x18] sm:$0xf] %vm1879_vm1, %v1877_v30  ;;  %v1878_v22 = vpack.c.bf16 %v1870_v21, %v1870_v21  ;;  %v1868_v34 = vsel %vm1852_vm7, %v1844_v55, %v1860_v7 }
 0x171   : > { %1884 = vst.msk [vmem:[%s2968_s6 + $0x10] sm:$0xf] %vm1879_vm1, %v1875_v56  ;;  %v1876_v3 = vpack.c.bf16 %v1868_v34, %v1868_v34 }
 0x172   : > { %1887 = vst.msk [vmem:[%s2968_s6 + $0x1c] sm:$0xf] %vm1879_vm1, %v1878_v22 }
 0x173   : > { %1885 = vst.msk [vmem:[%s2968_s6 + $0x14] sm:$0xf] %vm1879_vm1, %v1876_v3 }
 0x174   : > { %2343 = shalt.err (!%p2340_p3)
}
 0x175   : > { %s2344_s25 = scalar_lea.hbm %s2985_s11, 512  ;;  %s2348_s28 = scalar_lea.hbm %s3041_s3, 1024 }
 0x176   : > { %p2345_p4 = scmp.ne.s32.totalorder %s2985_s11, %s2344_s25  ;;  %p2349_p9 = scmp.lt.u32.totalorder %s2985_s11, %s3041_s3 }
 0x177   : > { %p2350_p10 = scmp.lt.u32.totalorder %s2348_s28, %s2344_s25  ;;  %p2352_p12 = scmp.lt.u32.totalorder %s2344_s25, %s2985_s11 }
 0x178   : > { %p2346_p7 = pnand %p2345_p4, %p2457_p5 }
 0x179   : > { %p2351_p11 = por %p2350_p10, %p2349_p9 }
 0x17a   : > { %p2347_p8 = pneg %p2346_p7 }
 0x17b   : > { %p2353_p13 = por %p2352_p12, %p2351_p11 }
 0x17d   : > { %p2354_p0 = pnand %p2353_p13, %p2347_p8 }
 0x17f   : > { %2357 = shalt.err (!%p2354_p0)
}
 0x180   : > { %s2397_s4 = smov 64   ;;  %s2398_s5 = smov 4  }
 0x181   : > { %2276 = dma.vmem_to_hbm [thread:$0]  (%p2457_p5), %s2987_s8, 512, %s2985_s11, %s2997_s16, %s2397_s4, %s2397_s4, %s2398_s5  }
 0x182 PF: > { %p2282_p1 = scmp.ge.s32.totalorder %s2392_s15, 2  ;;  %s1917_s6 = sand.u32 1, %s2380_s12  }
 0x183   : > { %s1918_s7 = scalar_lea.sflag [#allocation4], %s1917_s6 }
 0x184   : > { %p2279_p2 = pnand %p2282_p1, %p2461_p6 }
 0x186   : > { %2375 = dma.done.wait (!%p2279_p2), %s1918_s7, 512  }
 0x187   : > { %2377 = vsyncadd (!%p2279_p2), %s1918_s7, 4294966784  ;;  %p13_p3 = scmp.ge.s32.totalorder %s2444_s18, 4   ;;  %s3052_s12 = smov %s2384_s13 }
 0x188   : > { %s3053_s13 = smov %s2388_s14  ;;  %s3054_s14 = smov %s2455_s21 }
 0x189   : > { %s3055_s15 = smov %s2444_s18  ;;  %15 = sbr.rel (!%p13_p3) target bundleno = 3 (0x3), region = 69 }
 0x190   :  { %1923 = vsyncpa [#allocation4], 1 }
 0x191   :  { %1925 = vsyncpa [#allocation4 + $0x1], 1 }

</bundles_post_ra>
